<compile_context>
chip_gen: v5e
topology: v5e:2x2
jax: 0.10.0
libtpu: 0.0.40
codegen_flags: <defaults>
</compile_context>

<pallas_src>
import functools
import math

import jax
import jax.numpy as jnp
from jax import lax
from jax.experimental import pallas as pl
from jax.experimental.pallas import tpu as pltpu

EPS = 1e-6
NEG_INF = -1e9


# ----------------------------- in-kernel math --------------------------------
def _fast_recip(x):
    """EUP approximate reciprocal + one Newton step (~f32 accurate, no VALU div)."""
    r = pl.reciprocal(x, approx=True)
    return r * (2.0 - x * r)


def _layernorm(x, a, b, eps=EPS):
    """PyTorch-style custom LayerNorm: unbiased std (N-1), eps added to std."""
    d = x.shape[-1]
    mean = jnp.mean(x, axis=-1, keepdims=True)
    xc = x - mean
    var = jnp.sum(xc * xc, axis=-1, keepdims=True) * (1.0 / (d - 1))
    std = jnp.sqrt(var)
    return a * xc * _fast_recip(std + eps) + b


# ------------------------------- fused kernel --------------------------------
def fused_encoder_kernel(n_heads,
                         x_ref, mask_ref, na_ref, nb_ref,
                         wqkv_ref, bqkv_ref, wo_ref, bo_ref,
                         w1_ref, b1_ref, w2_ref, b2_ref,
                         ln1a_ref, ln1b_ref, ln2a_ref, ln2b_ref,
                         out_ref):
    layer = pl.program_id(1)
    n_layers = pl.num_programs(1)

    # Seed the VMEM-resident residual stream once per batch element.  The
    # output block index is constant across the layer axis, so it stays live in
    # VMEM for the whole layer sweep and is written back to HBM only once.
    @pl.when(layer == 0)
    def _():
        out_ref[...] = x_ref[...]

    x = out_ref[...]                                 # (S, D) residual stream
    s_len, d_model = x.shape
    dk = d_model // n_heads

    key_dead = mask_ref[...] == 0.0                  # (1, S) masked key positions

    # ---- sublayer 0: x + SelfAttention(LayerNorm(x)) -------------------------
    xn = _layernorm(x, ln1a_ref[...], ln1b_ref[...])
    # Single lane-dense QKV matmul; 1/sqrt(dk) already folded into the Q slice.
    qkv = jnp.dot(xn, wqkv_ref[...],
                  preferred_element_type=jnp.float32) + bqkv_ref[...]    # (S, 3D)

    heads = []
    for h in range(n_heads):                         # static unroll, static lane slices
        q_h = qkv[:, h * dk:(h + 1) * dk]
        k_h = qkv[:, d_model + h * dk:d_model + (h + 1) * dk]
        v_h = qkv[:, 2 * d_model + h * dk:2 * d_model + (h + 1) * dk]
        # q @ k^T as an MXU "NT" contraction (no explicit transpose needed).
        s = lax.dot_general(q_h, k_h, (((1,), (1,)), ((), ())),
                            preferred_element_type=jnp.float32)          # (S, S)
        s = jnp.where(key_dead, NEG_INF, s)          # exact masking (matches ref)
        s = s - jnp.max(s, axis=-1, keepdims=True)
        p = jnp.exp(s)
        p = p * _fast_recip(jnp.sum(p, axis=-1, keepdims=True))
        heads.append(jnp.dot(p, v_h, preferred_element_type=jnp.float32))

    # Heads concatenated on the lane axis; output projection + head reduction
    # fused into a single depth-D MXU contraction.
    o_cat = jnp.concatenate(heads, axis=-1)                              # (S, D)
    x = x + jnp.dot(o_cat, wo_ref[...],
                    preferred_element_type=jnp.float32) + bo_ref[...]

    # ---- sublayer 1: x + FFN(LayerNorm(x)) ------------------------------------
    xn2 = _layernorm(x, ln2a_ref[...], ln2b_ref[...])
    h1 = jnp.dot(xn2, w1_ref[...], preferred_element_type=jnp.float32) + b1_ref[...]
    h1 = jnp.maximum(h1, 0.0)                        # ReLU
    x = x + jnp.dot(h1, w2_ref[...], preferred_element_type=jnp.float32) + b2_ref[...]

    out_ref[...] = x

    # Final Encoder LayerNorm, only after the last layer.
    @pl.when(layer == n_layers - 1)
    def _():
        out_ref[...] = _layernorm(x, na_ref[...], nb_ref[...])


# --------------------------- one-time weight prep ------------------------------
def prepare_params(params, n_heads):
    """One-time re-layout of weights into layer-stacked, lane-dense, kernel-ready
    arrays.  Hoisted OUT of the jitted forward so no per-call HBM copies."""
    layers = params['layers']
    d_model = layers[0]['wq'].shape[0]
    dk = d_model // n_heads
    scale = 1.0 / math.sqrt(dk)

    # Fused QKV weight (L, D, 3D) / bias (L, 1, 3D); score scale folded into Q.
    wqkv = jnp.stack([jnp.concatenate(
        [lp['wq'] * scale, lp['wk'], lp['wv']], axis=-1) for lp in layers])
    bqkv = jnp.stack([jnp.concatenate(
        [lp['bq'] * scale, lp['bk'], lp['bv']], axis=-1) for lp in layers])

    stack = lambda name: jnp.stack([lp[name] for lp in layers])
    return dict(
        wqkv=wqkv, bqkv=bqkv,
        wo=stack('wo'), bo=stack('bo'),
        w1=stack('w1'), b1=stack('b1'),
        w2=stack('w2'), b2=stack('b2'),
        ln1a=stack('ln1a'), ln1b=stack('ln1b'),
        ln2a=stack('ln2a'), ln2b=stack('ln2b'),
        norm_a=params['norm_a'], norm_b=params['norm_b'])


# --------------------------------- BlockSpecs ----------------------------------
def _layer_spec(arr):
    """Per-layer stacked weight: leading layer dim squeezed, indexed by the layer
    grid axis (Pallas double-buffers -> layer l+1 weights prefetch behind l)."""
    nd = arr.ndim - 1
    return pl.BlockSpec((None,) + arr.shape[1:],
                        lambda b, l, _nd=nd: (l,) + (0,) * _nd)


def _batch_spec(arr):
    """Per-batch input: leading batch dim squeezed, indexed by the batch grid
    axis; constant across the layer axis so it is not re-DMA'd between layers."""
    nd = arr.ndim - 1
    return pl.BlockSpec((None,) + arr.shape[1:],
                        lambda b, l, _nd=nd: (b,) + (0,) * _nd)


def _const_spec(arr):
    """Grid-invariant input (final-norm params): same block every step."""
    nd = arr.ndim
    return pl.BlockSpec(arr.shape, lambda b, l, _nd=nd: (0,) * _nd)


# ---------------------------------- forward ------------------------------------
@functools.partial(jax.jit, static_argnums=(3,))
def encoder_forward(x, mask, prepped, n_heads):
    B, S, D = x.shape
    L = prepped['wqkv'].shape[0]
    d_ff = prepped['w1'].shape[2]
    dk = D // n_heads

    x = x.astype(jnp.float32)
    mask3 = mask.astype(jnp.float32).reshape(B, 1, S)   # per-batch key mask

    # Advisory cost hint for the XLA scheduler around the fused custom call.
    flops = B * L * (S * (2 * D * 3 * D + 2 * D * D + 4 * D * d_ff)
                     + 4 * n_heads * S * S * dk)
    transcendentals = B * L * (n_heads * S * S + 8 * S)
    weight_bytes = 4 * sum(int(v.size) for v in jax.tree_util.tree_leaves(prepped))
    bytes_accessed = 4 * (2 * B * S * D + B * S) + B * weight_bytes

    grid_spec = pltpu.PrefetchScalarGridSpec(
        num_scalar_prefetch=0,
        grid=(B, L),                                  # (parallel batch, layer sweep)
        in_specs=[
            _batch_spec(x), _batch_spec(mask3),
            _const_spec(prepped['norm_a']), _const_spec(prepped['norm_b']),
            _layer_spec(prepped['wqkv']), _layer_spec(prepped['bqkv']),
            _layer_spec(prepped['wo']), _layer_spec(prepped['bo']),
            _layer_spec(prepped['w1']), _layer_spec(prepped['b1']),
            _layer_spec(prepped['w2']), _layer_spec(prepped['b2']),
            _layer_spec(prepped['ln1a']), _layer_spec(prepped['ln1b']),
            _layer_spec(prepped['ln2a']), _layer_spec(prepped['ln2b']),
        ],
        # Residual carry: block index constant across the layer axis -> VMEM
        # resident for the full layer sweep of each batch element.
        out_specs=pl.BlockSpec((None, S, D), lambda b, l: (b, 0, 0)),
    )

    out = pl.pallas_call(
        functools.partial(fused_encoder_kernel, n_heads),
        out_shape=jax.ShapeDtypeStruct((B, S, D), jnp.float32),
        grid_spec=grid_spec,
        compiler_params=pltpu.CompilerParams(
            dimension_semantics=("parallel", "arbitrary"),
            vmem_limit_bytes=32 * 1024 * 1024),
        cost_estimate=pl.CostEstimate(flops=int(flops),
                                      transcendentals=int(transcendentals),
                                      bytes_accessed=int(bytes_accessed)),
    )(x, mask3,
      prepped['norm_a'], prepped['norm_b'],
      prepped['wqkv'], prepped['bqkv'], prepped['wo'], prepped['bo'],
      prepped['w1'], prepped['b1'], prepped['w2'], prepped['b2'],
      prepped['ln1a'], prepped['ln1b'], prepped['ln2a'], prepped['ln2b'])

    return out


# ------------------- independent pure-JAX reference ---------------------------
def encoder_forward_ref(x, mask, params, n_heads):
    """Straightforward reference mirroring the PyTorch module structure."""
    x = x.astype(jnp.float32)
    B, S, D = x.shape
    dk = D // n_heads

    def ln(v, a, b, eps=EPS):
        mean = jnp.mean(v, axis=-1, keepdims=True)
        std = jnp.std(v, axis=-1, ddof=1, keepdims=True)   # torch unbiased std
        return a * (v - mean) / (std + eps) + b

    for lp in params['layers']:
        xn = ln(x, lp['ln1a'], lp['ln1b'])
        q = xn @ lp['wq'] + lp['bq']
        k = xn @ lp['wk'] + lp['bk']
        v = xn @ lp['wv'] + lp['bv']
        heads = []
        for h in range(n_heads):
            sl = slice(h * dk, (h + 1) * dk)
            s = jnp.einsum('bqd,bkd->bqk', q[..., sl], k[..., sl]) / math.sqrt(dk)
            s = jnp.where(mask[:, None, :] == 0.0, NEG_INF, s)
            p = jax.nn.softmax(s, axis=-1)
            heads.append(jnp.einsum('bqk,bkd->bqd', p, v[..., sl]))
        x = x + (jnp.concatenate(heads, axis=-1) @ lp['wo'] + lp['bo'])

        xn2 = ln(x, lp['ln2a'], lp['ln2b'])
        h1 = jnp.maximum(xn2 @ lp['w1'] + lp['b1'], 0.0)
        x = x + (h1 @ lp['w2'] + lp['b2'])

    return ln(x, params['norm_a'], params['norm_b'])


# --------------------------- deterministic params -----------------------------
def make_params(key, n_layers, d_model, d_ff):
    layers = []
    for li in range(n_layers):
        ks = jax.random.split(jax.random.fold_in(key, li), 16)
        nrm = lambda k, shape, s=0.05: s * jax.random.normal(k, shape, jnp.float32)
        layers.append(dict(
            wq=nrm(ks[0], (d_model, d_model)),
            bq=nrm(ks[1], (1, d_model), 0.02),
            wk=nrm(ks[2], (d_model, d_model)),
            bk=nrm(ks[3], (1, d_model), 0.02),
            wv=nrm(ks[4], (d_model, d_model)),
            bv=nrm(ks[5], (1, d_model), 0.02),
            wo=nrm(ks[6], (d_model, d_model)),
            bo=nrm(ks[7], (1, d_model), 0.02),
            w1=nrm(ks[8], (d_model, d_ff)),
            b1=nrm(ks[9], (1, d_ff), 0.02),
            w2=nrm(ks[10], (d_ff, d_model)),
            b2=nrm(ks[11], (1, d_model), 0.02),
            ln1a=1.0 + nrm(ks[12], (1, d_model), 0.1),
            ln1b=nrm(ks[13], (1, d_model), 0.05),
            ln2a=1.0 + nrm(ks[14], (1, d_model), 0.1),
            ln2b=nrm(ks[15], (1, d_model), 0.05),
        ))
    ka, kb = jax.random.split(jax.random.fold_in(key, 10_000))
    return dict(
        layers=layers,
        norm_a=1.0 + 0.1 * jax.random.normal(ka, (1, d_model), jnp.float32),
        norm_b=0.05 * jax.random.normal(kb, (1, d_model), jnp.float32))


if __name__ == "__main__":
    B, S, D = 2, 8, 32            # batch, seq, hidden
    N_LAYERS, N_HEADS, D_FF = 2, 4, 64

    key = jax.random.PRNGKey(0)
    kx, kp = jax.random.split(key)
    x = jax.random.normal(kx, (B, S, D), jnp.float32)
    mask = jnp.ones((B, S), jnp.float32).at[1, -2:].set(0.0)  # mask 2 keys of batch 1
    params = make_params(kp, N_LAYERS, D, D_FF)

    prepped = prepare_params(params, N_HEADS)          # one-time weight re-layout
    out = encoder_forward(x, mask, prepped, N_HEADS)
    out = jax.block_until_ready(out)

    ref = encoder_forward_ref(x, mask, params, N_HEADS)
    assert out.shape == (B, S, D)
    assert jnp.allclose(out, ref, atol=5e-4, rtol=5e-4), "mismatch vs reference"

    print("KERNEL_OK")
</pallas_src>

<mosaic_0001>
module attributes {stable_mosaic.version = 11 : i64} {
  func.func @fused_encoder_kernel(%arg0: i32, %arg1: i32, %arg2: memref<1x8x32xf32, #tpu.memory_space<vmem>>, %arg3: memref<1x1x8xf32, #tpu.memory_space<vmem>>, %arg4: memref<1x32xf32, #tpu.memory_space<vmem>>, %arg5: memref<1x32xf32, #tpu.memory_space<vmem>>, %arg6: memref<1x32x96xf32, #tpu.memory_space<vmem>>, %arg7: memref<1x1x96xf32, #tpu.memory_space<vmem>>, %arg8: memref<1x32x32xf32, #tpu.memory_space<vmem>>, %arg9: memref<1x1x32xf32, #tpu.memory_space<vmem>>, %arg10: memref<1x32x64xf32, #tpu.memory_space<vmem>>, %arg11: memref<1x1x64xf32, #tpu.memory_space<vmem>>, %arg12: memref<1x64x32xf32, #tpu.memory_space<vmem>>, %arg13: memref<1x1x32xf32, #tpu.memory_space<vmem>>, %arg14: memref<1x1x32xf32, #tpu.memory_space<vmem>>, %arg15: memref<1x1x32xf32, #tpu.memory_space<vmem>>, %arg16: memref<1x1x32xf32, #tpu.memory_space<vmem>>, %arg17: memref<1x1x32xf32, #tpu.memory_space<vmem>>, %arg18: memref<1x8x32xf32, #tpu.memory_space<vmem>>) attributes {dimension_semantics = [#tpu.dimension_semantics<parallel>, #tpu.dimension_semantics<arbitrary>], iteration_bounds = array<i64: 2, 2>, scalar_prefetch = 0 : i64, scratch_operands = 0 : i64, tpu.core_type = #tpu.core_type<tc>, window_params = [{transform_indices = @transform_0, window_bounds = array<i64: 1, 8, 32>}, {transform_indices = @transform_1, window_bounds = array<i64: 1, 1, 8>}, {pipeline_mode = #tpu.pipeline_mode<synchronous>, transform_indices = @transform_2, window_bounds = array<i64: 1, 32>}, {pipeline_mode = #tpu.pipeline_mode<synchronous>, transform_indices = @transform_3, window_bounds = array<i64: 1, 32>}, {transform_indices = @transform_4, window_bounds = array<i64: 1, 32, 96>}, {transform_indices = @transform_5, window_bounds = array<i64: 1, 1, 96>}, {transform_indices = @transform_6, window_bounds = array<i64: 1, 32, 32>}, {transform_indices = @transform_7, window_bounds = array<i64: 1, 1, 32>}, {transform_indices = @transform_8, window_bounds = array<i64: 1, 32, 64>}, {transform_indices = @transform_9, window_bounds = array<i64: 1, 1, 64>}, {transform_indices = @transform_10, window_bounds = array<i64: 1, 64, 32>}, {transform_indices = @transform_11, window_bounds = array<i64: 1, 1, 32>}, {transform_indices = @transform_12, window_bounds = array<i64: 1, 1, 32>}, {transform_indices = @transform_13, window_bounds = array<i64: 1, 1, 32>}, {transform_indices = @transform_14, window_bounds = array<i64: 1, 1, 32>}, {transform_indices = @transform_15, window_bounds = array<i64: 1, 1, 32>}, {transform_indices = @transform_16, window_bounds = array<i64: 1, 8, 32>}]} {
    %c0_i32 = arith.constant 0 : i32
    %0 = arith.cmpi eq, %arg1, %c0_i32 : i32
    %1 = arith.extui %0 : i1 to i32
    %c0_i32_0 = arith.constant 0 : i32
    %2 = arith.cmpi ne, %1, %c0_i32_0 : i32
    scf.if %2 {
      %c0_87 = arith.constant 0 : index
      %c0_88 = arith.constant 0 : index
      %c0_89 = arith.constant 0 : index
      %198 = vector.load %arg2[%c0_87, %c0_88, %c0_89] : memref<1x8x32xf32, #tpu.memory_space<vmem>>, vector<1x8x32xf32>
      %199 = vector.shape_cast %198 : vector<1x8x32xf32> to vector<8x32xf32>
      %c0_90 = arith.constant 0 : index
      %c0_91 = arith.constant 0 : index
      %c0_92 = arith.constant 0 : index
      %200 = vector.load %arg18[%c0_90, %c0_91, %c0_92] : memref<1x8x32xf32, #tpu.memory_space<vmem>>, vector<1x8x32xf32>
      %201 = vector.shape_cast %200 : vector<1x8x32xf32> to vector<8x32xf32>
      %202 = vector.shape_cast %199 : vector<8x32xf32> to vector<1x8x32xf32>
      tpu.vector_store %arg18[%c0_90, %c0_91, %c0_92], %202 {strides = array<i32>} : memref<1x8x32xf32, #tpu.memory_space<vmem>>, vector<1x8x32xf32>,
    } else {
    }
    %c0 = arith.constant 0 : index
    %c0_1 = arith.constant 0 : index
    %c0_2 = arith.constant 0 : index
    %3 = vector.load %arg18[%c0, %c0_1, %c0_2] : memref<1x8x32xf32, #tpu.memory_space<vmem>>, vector<1x8x32xf32>
    %4 = vector.shape_cast %3 : vector<1x8x32xf32> to vector<8x32xf32>
    %c0_3 = arith.constant 0 : index
    %c0_4 = arith.constant 0 : index
    %c0_5 = arith.constant 0 : index
    %5 = vector.load %arg3[%c0_3, %c0_4, %c0_5] : memref<1x1x8xf32, #tpu.memory_space<vmem>>, vector<1x1x8xf32>
    %6 = vector.shape_cast %5 : vector<1x1x8xf32> to vector<1x8xf32>
    %cst = arith.constant 0.000000e+00 : f32
    %7 = vector.broadcast %cst : f32 to vector<1x8xf32>
    %8 = arith.cmpf oeq, %6, %7 : vector<1x8xf32>
    %c0_6 = arith.constant 0 : index
    %c0_7 = arith.constant 0 : index
    %c0_8 = arith.constant 0 : index
    %9 = vector.load %arg14[%c0_6, %c0_7, %c0_8] : memref<1x1x32xf32, #tpu.memory_space<vmem>>, vector<1x1x32xf32>
    %10 = vector.shape_cast %9 : vector<1x1x32xf32> to vector<1x32xf32>
    %c0_9 = arith.constant 0 : index
    %c0_10 = arith.constant 0 : index
    %c0_11 = arith.constant 0 : index
    %11 = vector.load %arg15[%c0_9, %c0_10, %c0_11] : memref<1x1x32xf32, #tpu.memory_space<vmem>>, vector<1x1x32xf32>
    %12 = vector.shape_cast %11 : vector<1x1x32xf32> to vector<1x32xf32>
    %cst_12 = arith.constant dense<0.000000e+00> : vector<8xf32>
    %13 = vector.multi_reduction <add>, %4, %cst_12 [1] : vector<8x32xf32> to vector<8xf32>
    %14 = vector.shape_cast %13 : vector<8xf32> to vector<8x1xf32>
    %cst_13 = arith.constant 3.200000e+01 : f32
    %15 = vector.broadcast %cst_13 : f32 to vector<8x1xf32>
    %16 = arith.divf %14, %15 : vector<8x1xf32>
    %17 = vector.broadcast %16 : vector<8x1xf32> to vector<8x32xf32>
    %18 = arith.subf %4, %17 : vector<8x32xf32>
    %19 = arith.mulf %18, %18 : vector<8x32xf32>
    %cst_14 = arith.constant dense<0.000000e+00> : vector<8xf32>
    %20 = vector.multi_reduction <add>, %19, %cst_14 [1] : vector<8x32xf32> to vector<8xf32>
    %21 = vector.shape_cast %20 : vector<8xf32> to vector<8x1xf32>
    %cst_15 = arith.constant 0.0322580636 : f32
    %22 = vector.broadcast %cst_15 : f32 to vector<8x1xf32>
    %23 = arith.mulf %21, %22 : vector<8x1xf32>
    %24 = math.sqrt %23 : vector<8x1xf32>
    %25 = vector.broadcast %10 : vector<1x32xf32> to vector<8x32xf32>
    %26 = arith.mulf %25, %18 : vector<8x32xf32>
    %cst_16 = arith.constant 9.99999997E-7 : f32
    %27 = vector.broadcast %cst_16 : f32 to vector<8x1xf32>
    %28 = arith.addf %24, %27 : vector<8x1xf32>
    %29 = tpu.reciprocal %28 {approx = true} : vector<8x1xf32> -> vector<8x1xf32>
    %30 = arith.mulf %28, %29 : vector<8x1xf32>
    %cst_17 = arith.constant 2.000000e+00 : f32
    %31 = vector.broadcast %cst_17 : f32 to vector<8x1xf32>
    %32 = arith.subf %31, %30 : vector<8x1xf32>
    %33 = arith.mulf %29, %32 : vector<8x1xf32>
    %34 = vector.broadcast %33 : vector<8x1xf32> to vector<8x32xf32>
    %35 = arith.mulf %26, %34 : vector<8x32xf32>
    %36 = vector.broadcast %12 : vector<1x32xf32> to vector<8x32xf32>
    %37 = arith.addf %35, %36 : vector<8x32xf32>
    %c0_18 = arith.constant 0 : index
    %c0_19 = arith.constant 0 : index
    %c0_20 = arith.constant 0 : index
    %38 = vector.load %arg6[%c0_18, %c0_19, %c0_20] : memref<1x32x96xf32, #tpu.memory_space<vmem>>, vector<1x32x96xf32>
    %39 = vector.shape_cast %38 : vector<1x32x96xf32> to vector<32x96xf32>
    %cst_21 = arith.constant dense<0.000000e+00> : vector<8x96xf32>
    %40 = tpu.matmul %37, %39, %cst_21 {dimension_numbers = #tpu.dot_dimension_numbers<[1], [0], [0], [1], [0, 0, 1, 1], [], []>} : vector<8x32xf32>, vector<32x96xf32>, vector<8x96xf32> -> vector<8x96xf32>
    %c0_22 = arith.constant 0 : index
    %c0_23 = arith.constant 0 : index
    %c0_24 = arith.constant 0 : index
    %41 = vector.load %arg7[%c0_22, %c0_23, %c0_24] : memref<1x1x96xf32, #tpu.memory_space<vmem>>, vector<1x1x96xf32>
    %42 = vector.shape_cast %41 : vector<1x1x96xf32> to vector<1x96xf32>
    %43 = vector.broadcast %42 : vector<1x96xf32> to vector<8x96xf32>
    %44 = arith.addf %40, %43 : vector<8x96xf32>
    %45 = vector.extract_strided_slice %44 {offsets = [0, 0], sizes = [8, 8], strides = [1, 1]} : vector<8x96xf32> to vector<8x8xf32>
    %46 = vector.extract_strided_slice %44 {offsets = [0, 32], sizes = [8, 8], strides = [1, 1]} : vector<8x96xf32> to vector<8x8xf32>
    %47 = vector.extract_strided_slice %44 {offsets = [0, 64], sizes = [8, 8], strides = [1, 1]} : vector<8x96xf32> to vector<8x8xf32>
    %cst_25 = arith.constant dense<0.000000e+00> : vector<8x8xf32>
    %48 = tpu.matmul %45, %46, %cst_25 {dimension_numbers = #tpu.dot_dimension_numbers<[1], [1], [0], [0], [0, 0, 1, 0], [], []>} : vector<8x8xf32>, vector<8x8xf32>, vector<8x8xf32> -> vector<8x8xf32>
    %cst_26 = arith.constant -1.000000e+09 : f32
    %49 = vector.shape_cast %8 : vector<1x8xi1> to vector<1x8xi1>
    %50 = vector.broadcast %49 : vector<1x8xi1> to vector<8x8xi1>
    %51 = vector.broadcast %cst_26 : f32 to vector<8x8xf32>
    %52 = arith.select %50, %51, %48 : vector<8x8xi1>, vector<8x8xf32>
    %cst_27 = arith.constant dense<0xFF800000> : vector<8xf32>
    %53 = vector.multi_reduction <maximumf>, %52, %cst_27 [1] : vector<8x8xf32> to vector<8xf32>
    %54 = vector.shape_cast %53 : vector<8xf32> to vector<8x1xf32>
    %55 = vector.broadcast %54 : vector<8x1xf32> to vector<8x8xf32>
    %56 = arith.subf %52, %55 : vector<8x8xf32>
    %57 = math.exp %56 : vector<8x8xf32>
    %cst_28 = arith.constant dense<0.000000e+00> : vector<8xf32>
    %58 = vector.multi_reduction <add>, %57, %cst_28 [1] : vector<8x8xf32> to vector<8xf32>
    %59 = vector.shape_cast %58 : vector<8xf32> to vector<8x1xf32>
    %60 = tpu.reciprocal %59 {approx = true} : vector<8x1xf32> -> vector<8x1xf32>
    %61 = arith.mulf %59, %60 : vector<8x1xf32>
    %cst_29 = arith.constant 2.000000e+00 : f32
    %62 = vector.broadcast %cst_29 : f32 to vector<8x1xf32>
    %63 = arith.subf %62, %61 : vector<8x1xf32>
    %64 = arith.mulf %60, %63 : vector<8x1xf32>
    %65 = vector.broadcast %64 : vector<8x1xf32> to vector<8x8xf32>
    %66 = arith.mulf %57, %65 : vector<8x8xf32>
    %cst_30 = arith.constant dense<0.000000e+00> : vector<8x8xf32>
    %67 = tpu.matmul %66, %47, %cst_30 {dimension_numbers = #tpu.dot_dimension_numbers<[1], [0], [0], [1], [0, 0, 1, 1], [], []>} : vector<8x8xf32>, vector<8x8xf32>, vector<8x8xf32> -> vector<8x8xf32>
    %68 = vector.extract_strided_slice %44 {offsets = [0, 8], sizes = [8, 8], strides = [1, 1]} : vector<8x96xf32> to vector<8x8xf32>
    %69 = vector.extract_strided_slice %44 {offsets = [0, 40], sizes = [8, 8], strides = [1, 1]} : vector<8x96xf32> to vector<8x8xf32>
    %70 = vector.extract_strided_slice %44 {offsets = [0, 72], sizes = [8, 8], strides = [1, 1]} : vector<8x96xf32> to vector<8x8xf32>
    %cst_31 = arith.constant dense<0.000000e+00> : vector<8x8xf32>
    %71 = tpu.matmul %68, %69, %cst_31 {dimension_numbers = #tpu.dot_dimension_numbers<[1], [1], [0], [0], [0, 0, 1, 0], [], []>} : vector<8x8xf32>, vector<8x8xf32>, vector<8x8xf32> -> vector<8x8xf32>
    %cst_32 = arith.constant -1.000000e+09 : f32
    %72 = vector.shape_cast %8 : vector<1x8xi1> to vector<1x8xi1>
    %73 = vector.broadcast %72 : vector<1x8xi1> to vector<8x8xi1>
    %74 = vector.broadcast %cst_32 : f32 to vector<8x8xf32>
    %75 = arith.select %73, %74, %71 : vector<8x8xi1>, vector<8x8xf32>
    %cst_33 = arith.constant dense<0xFF800000> : vector<8xf32>
    %76 = vector.multi_reduction <maximumf>, %75, %cst_33 [1] : vector<8x8xf32> to vector<8xf32>
    %77 = vector.shape_cast %76 : vector<8xf32> to vector<8x1xf32>
    %78 = vector.broadcast %77 : vector<8x1xf32> to vector<8x8xf32>
    %79 = arith.subf %75, %78 : vector<8x8xf32>
    %80 = math.exp %79 : vector<8x8xf32>
    %cst_34 = arith.constant dense<0.000000e+00> : vector<8xf32>
    %81 = vector.multi_reduction <add>, %80, %cst_34 [1] : vector<8x8xf32> to vector<8xf32>
    %82 = vector.shape_cast %81 : vector<8xf32> to vector<8x1xf32>
    %83 = tpu.reciprocal %82 {approx = true} : vector<8x1xf32> -> vector<8x1xf32>
    %84 = arith.mulf %82, %83 : vector<8x1xf32>
    %cst_35 = arith.constant 2.000000e+00 : f32
    %85 = vector.broadcast %cst_35 : f32 to vector<8x1xf32>
    %86 = arith.subf %85, %84 : vector<8x1xf32>
    %87 = arith.mulf %83, %86 : vector<8x1xf32>
    %88 = vector.broadcast %87 : vector<8x1xf32> to vector<8x8xf32>
    %89 = arith.mulf %80, %88 : vector<8x8xf32>
    %cst_36 = arith.constant dense<0.000000e+00> : vector<8x8xf32>
    %90 = tpu.matmul %89, %70, %cst_36 {dimension_numbers = #tpu.dot_dimension_numbers<[1], [0], [0], [1], [0, 0, 1, 1], [], []>} : vector<8x8xf32>, vector<8x8xf32>, vector<8x8xf32> -> vector<8x8xf32>
    %91 = vector.extract_strided_slice %44 {offsets = [0, 16], sizes = [8, 8], strides = [1, 1]} : vector<8x96xf32> to vector<8x8xf32>
    %92 = vector.extract_strided_slice %44 {offsets = [0, 48], sizes = [8, 8], strides = [1, 1]} : vector<8x96xf32> to vector<8x8xf32>
    %93 = vector.extract_strided_slice %44 {offsets = [0, 80], sizes = [8, 8], strides = [1, 1]} : vector<8x96xf32> to vector<8x8xf32>
    %cst_37 = arith.constant dense<0.000000e+00> : vector<8x8xf32>
    %94 = tpu.matmul %91, %92, %cst_37 {dimension_numbers = #tpu.dot_dimension_numbers<[1], [1], [0], [0], [0, 0, 1, 0], [], []>} : vector<8x8xf32>, vector<8x8xf32>, vector<8x8xf32> -> vector<8x8xf32>
    %cst_38 = arith.constant -1.000000e+09 : f32
    %95 = vector.shape_cast %8 : vector<1x8xi1> to vector<1x8xi1>
    %96 = vector.broadcast %95 : vector<1x8xi1> to vector<8x8xi1>
    %97 = vector.broadcast %cst_38 : f32 to vector<8x8xf32>
    %98 = arith.select %96, %97, %94 : vector<8x8xi1>, vector<8x8xf32>
    %cst_39 = arith.constant dense<0xFF800000> : vector<8xf32>
    %99 = vector.multi_reduction <maximumf>, %98, %cst_39 [1] : vector<8x8xf32> to vector<8xf32>
    %100 = vector.shape_cast %99 : vector<8xf32> to vector<8x1xf32>
    %101 = vector.broadcast %100 : vector<8x1xf32> to vector<8x8xf32>
    %102 = arith.subf %98, %101 : vector<8x8xf32>
    %103 = math.exp %102 : vector<8x8xf32>
    %cst_40 = arith.constant dense<0.000000e+00> : vector<8xf32>
    %104 = vector.multi_reduction <add>, %103, %cst_40 [1] : vector<8x8xf32> to vector<8xf32>
    %105 = vector.shape_cast %104 : vector<8xf32> to vector<8x1xf32>
    %106 = tpu.reciprocal %105 {approx = true} : vector<8x1xf32> -> vector<8x1xf32>
    %107 = arith.mulf %105, %106 : vector<8x1xf32>
    %cst_41 = arith.constant 2.000000e+00 : f32
    %108 = vector.broadcast %cst_41 : f32 to vector<8x1xf32>
    %109 = arith.subf %108, %107 : vector<8x1xf32>
    %110 = arith.mulf %106, %109 : vector<8x1xf32>
    %111 = vector.broadcast %110 : vector<8x1xf32> to vector<8x8xf32>
    %112 = arith.mulf %103, %111 : vector<8x8xf32>
    %cst_42 = arith.constant dense<0.000000e+00> : vector<8x8xf32>
    %113 = tpu.matmul %112, %93, %cst_42 {dimension_numbers = #tpu.dot_dimension_numbers<[1], [0], [0], [1], [0, 0, 1, 1], [], []>} : vector<8x8xf32>, vector<8x8xf32>, vector<8x8xf32> -> vector<8x8xf32>
    %114 = vector.extract_strided_slice %44 {offsets = [0, 24], sizes = [8, 8], strides = [1, 1]} : vector<8x96xf32> to vector<8x8xf32>
    %115 = vector.extract_strided_slice %44 {offsets = [0, 56], sizes = [8, 8], strides = [1, 1]} : vector<8x96xf32> to vector<8x8xf32>
    %116 = vector.extract_strided_slice %44 {offsets = [0, 88], sizes = [8, 8], strides = [1, 1]} : vector<8x96xf32> to vector<8x8xf32>
    %cst_43 = arith.constant dense<0.000000e+00> : vector<8x8xf32>
    %117 = tpu.matmul %114, %115, %cst_43 {dimension_numbers = #tpu.dot_dimension_numbers<[1], [1], [0], [0], [0, 0, 1, 0], [], []>} : vector<8x8xf32>, vector<8x8xf32>, vector<8x8xf32> -> vector<8x8xf32>
    %cst_44 = arith.constant -1.000000e+09 : f32
    %118 = vector.shape_cast %8 : vector<1x8xi1> to vector<1x8xi1>
    %119 = vector.broadcast %118 : vector<1x8xi1> to vector<8x8xi1>
    %120 = vector.broadcast %cst_44 : f32 to vector<8x8xf32>
    %121 = arith.select %119, %120, %117 : vector<8x8xi1>, vector<8x8xf32>
    %cst_45 = arith.constant dense<0xFF800000> : vector<8xf32>
    %122 = vector.multi_reduction <maximumf>, %121, %cst_45 [1] : vector<8x8xf32> to vector<8xf32>
    %123 = vector.shape_cast %122 : vector<8xf32> to vector<8x1xf32>
    %124 = vector.broadcast %123 : vector<8x1xf32> to vector<8x8xf32>
    %125 = arith.subf %121, %124 : vector<8x8xf32>
    %126 = math.exp %125 : vector<8x8xf32>
    %cst_46 = arith.constant dense<0.000000e+00> : vector<8xf32>
    %127 = vector.multi_reduction <add>, %126, %cst_46 [1] : vector<8x8xf32> to vector<8xf32>
    %128 = vector.shape_cast %127 : vector<8xf32> to vector<8x1xf32>
    %129 = tpu.reciprocal %128 {approx = true} : vector<8x1xf32> -> vector<8x1xf32>
    %130 = arith.mulf %128, %129 : vector<8x1xf32>
    %cst_47 = arith.constant 2.000000e+00 : f32
    %131 = vector.broadcast %cst_47 : f32 to vector<8x1xf32>
    %132 = arith.subf %131, %130 : vector<8x1xf32>
    %133 = arith.mulf %129, %132 : vector<8x1xf32>
    %134 = vector.broadcast %133 : vector<8x1xf32> to vector<8x8xf32>
    %135 = arith.mulf %126, %134 : vector<8x8xf32>
    %cst_48 = arith.constant dense<0.000000e+00> : vector<8x8xf32>
    %136 = tpu.matmul %135, %116, %cst_48 {dimension_numbers = #tpu.dot_dimension_numbers<[1], [0], [0], [1], [0, 0, 1, 1], [], []>} : vector<8x8xf32>, vector<8x8xf32>, vector<8x8xf32> -> vector<8x8xf32>
    %137 = tpu.concatenate %67, %90, %113, %136 in 1 : vector<8x8xf32>, vector<8x8xf32>, vector<8x8xf32>, vector<8x8xf32> -> vector<8x32xf32>
    %c0_49 = arith.constant 0 : index
    %c0_50 = arith.constant 0 : index
    %c0_51 = arith.constant 0 : index
    %138 = vector.load %arg8[%c0_49, %c0_50, %c0_51] : memref<1x32x32xf32, #tpu.memory_space<vmem>>, vector<1x32x32xf32>
    %139 = vector.shape_cast %138 : vector<1x32x32xf32> to vector<32x32xf32>
    %cst_52 = arith.constant dense<0.000000e+00> : vector<8x32xf32>
    %140 = tpu.matmul %137, %139, %cst_52 {dimension_numbers = #tpu.dot_dimension_numbers<[1], [0], [0], [1], [0, 0, 1, 1], [], []>} : vector<8x32xf32>, vector<32x32xf32>, vector<8x32xf32> -> vector<8x32xf32>
    %141 = arith.addf %4, %140 : vector<8x32xf32>
    %c0_53 = arith.constant 0 : index
    %c0_54 = arith.constant 0 : index
    %c0_55 = arith.constant 0 : index
    %142 = vector.load %arg9[%c0_53, %c0_54, %c0_55] : memref<1x1x32xf32, #tpu.memory_space<vmem>>, vector<1x1x32xf32>
    %143 = vector.shape_cast %142 : vector<1x1x32xf32> to vector<1x32xf32>
    %144 = vector.broadcast %143 : vector<1x32xf32> to vector<8x32xf32>
    %145 = arith.addf %141, %144 : vector<8x32xf32>
    %c0_56 = arith.constant 0 : index
    %c0_57 = arith.constant 0 : index
    %c0_58 = arith.constant 0 : index
    %146 = vector.load %arg16[%c0_56, %c0_57, %c0_58] : memref<1x1x32xf32, #tpu.memory_space<vmem>>, vector<1x1x32xf32>
    %147 = vector.shape_cast %146 : vector<1x1x32xf32> to vector<1x32xf32>
    %c0_59 = arith.constant 0 : index
    %c0_60 = arith.constant 0 : index
    %c0_61 = arith.constant 0 : index
    %148 = vector.load %arg17[%c0_59, %c0_60, %c0_61] : memref<1x1x32xf32, #tpu.memory_space<vmem>>, vector<1x1x32xf32>
    %149 = vector.shape_cast %148 : vector<1x1x32xf32> to vector<1x32xf32>
    %cst_62 = arith.constant dense<0.000000e+00> : vector<8xf32>
    %150 = vector.multi_reduction <add>, %145, %cst_62 [1] : vector<8x32xf32> to vector<8xf32>
    %151 = vector.shape_cast %150 : vector<8xf32> to vector<8x1xf32>
    %cst_63 = arith.constant 3.200000e+01 : f32
    %152 = vector.broadcast %cst_63 : f32 to vector<8x1xf32>
    %153 = arith.divf %151, %152 : vector<8x1xf32>
    %154 = vector.broadcast %153 : vector<8x1xf32> to vector<8x32xf32>
    %155 = arith.subf %145, %154 : vector<8x32xf32>
    %156 = arith.mulf %155, %155 : vector<8x32xf32>
    %cst_64 = arith.constant dense<0.000000e+00> : vector<8xf32>
    %157 = vector.multi_reduction <add>, %156, %cst_64 [1] : vector<8x32xf32> to vector<8xf32>
    %158 = vector.shape_cast %157 : vector<8xf32> to vector<8x1xf32>
    %cst_65 = arith.constant 0.0322580636 : f32
    %159 = vector.broadcast %cst_65 : f32 to vector<8x1xf32>
    %160 = arith.mulf %158, %159 : vector<8x1xf32>
    %161 = math.sqrt %160 : vector<8x1xf32>
    %162 = vector.broadcast %147 : vector<1x32xf32> to vector<8x32xf32>
    %163 = arith.mulf %162, %155 : vector<8x32xf32>
    %cst_66 = arith.constant 9.99999997E-7 : f32
    %164 = vector.broadcast %cst_66 : f32 to vector<8x1xf32>
    %165 = arith.addf %161, %164 : vector<8x1xf32>
    %166 = tpu.reciprocal %165 {approx = true} : vector<8x1xf32> -> vector<8x1xf32>
    %167 = arith.mulf %165, %166 : vector<8x1xf32>
    %cst_67 = arith.constant 2.000000e+00 : f32
    %168 = vector.broadcast %cst_67 : f32 to vector<8x1xf32>
    %169 = arith.subf %168, %167 : vector<8x1xf32>
    %170 = arith.mulf %166, %169 : vector<8x1xf32>
    %171 = vector.broadcast %170 : vector<8x1xf32> to vector<8x32xf32>
    %172 = arith.mulf %163, %171 : vector<8x32xf32>
    %173 = vector.broadcast %149 : vector<1x32xf32> to vector<8x32xf32>
    %174 = arith.addf %172, %173 : vector<8x32xf32>
    %c0_68 = arith.constant 0 : index
    %c0_69 = arith.constant 0 : index
    %c0_70 = arith.constant 0 : index
    %175 = vector.load %arg10[%c0_68, %c0_69, %c0_70] : memref<1x32x64xf32, #tpu.memory_space<vmem>>, vector<1x32x64xf32>
    %176 = vector.shape_cast %175 : vector<1x32x64xf32> to vector<32x64xf32>
    %cst_71 = arith.constant dense<0.000000e+00> : vector<8x64xf32>
    %177 = tpu.matmul %174, %176, %cst_71 {dimension_numbers = #tpu.dot_dimension_numbers<[1], [0], [0], [1], [0, 0, 1, 1], [], []>} : vector<8x32xf32>, vector<32x64xf32>, vector<8x64xf32> -> vector<8x64xf32>
    %c0_72 = arith.constant 0 : index
    %c0_73 = arith.constant 0 : index
    %c0_74 = arith.constant 0 : index
    %178 = vector.load %arg11[%c0_72, %c0_73, %c0_74] : memref<1x1x64xf32, #tpu.memory_space<vmem>>, vector<1x1x64xf32>
    %179 = vector.shape_cast %178 : vector<1x1x64xf32> to vector<1x64xf32>
    %180 = vector.broadcast %179 : vector<1x64xf32> to vector<8x64xf32>
    %181 = arith.addf %177, %180 : vector<8x64xf32>
    %cst_75 = arith.constant 0.000000e+00 : f32
    %182 = vector.broadcast %cst_75 : f32 to vector<8x64xf32>
    %183 = arith.maximumf %181, %182 : vector<8x64xf32>
    %c0_76 = arith.constant 0 : index
    %c0_77 = arith.constant 0 : index
    %c0_78 = arith.constant 0 : index
    %184 = vector.load %arg12[%c0_76, %c0_77, %c0_78] : memref<1x64x32xf32, #tpu.memory_space<vmem>>, vector<1x64x32xf32>
    %185 = vector.shape_cast %184 : vector<1x64x32xf32> to vector<64x32xf32>
    %cst_79 = arith.constant dense<0.000000e+00> : vector<8x32xf32>
    %186 = tpu.matmul %183, %185, %cst_79 {dimension_numbers = #tpu.dot_dimension_numbers<[1], [0], [0], [1], [0, 0, 1, 1], [], []>} : vector<8x64xf32>, vector<64x32xf32>, vector<8x32xf32> -> vector<8x32xf32>
    %187 = arith.addf %145, %186 : vector<8x32xf32>
    %c0_80 = arith.constant 0 : index
    %c0_81 = arith.constant 0 : index
    %c0_82 = arith.constant 0 : index
    %188 = vector.load %arg13[%c0_80, %c0_81, %c0_82] : memref<1x1x32xf32, #tpu.memory_space<vmem>>, vector<1x1x32xf32>
    %189 = vector.shape_cast %188 : vector<1x1x32xf32> to vector<1x32xf32>
    %190 = vector.broadcast %189 : vector<1x32xf32> to vector<8x32xf32>
    %191 = arith.addf %187, %190 : vector<8x32xf32>
    %c0_83 = arith.constant 0 : index
    %c0_84 = arith.constant 0 : index
    %c0_85 = arith.constant 0 : index
    %192 = vector.load %arg18[%c0_83, %c0_84, %c0_85] : memref<1x8x32xf32, #tpu.memory_space<vmem>>, vector<1x8x32xf32>
    %193 = vector.shape_cast %192 : vector<1x8x32xf32> to vector<8x32xf32>
    %194 = vector.shape_cast %191 : vector<8x32xf32> to vector<1x8x32xf32>
    tpu.vector_store %arg18[%c0_83, %c0_84, %c0_85], %194 {strides = array<i32>} : memref<1x8x32xf32, #tpu.memory_space<vmem>>, vector<1x8x32xf32>,
    %c1_i32 = arith.constant 1 : i32
    %195 = arith.cmpi eq, %arg1, %c1_i32 : i32
    %196 = arith.extui %195 : i1 to i32
    %c0_i32_86 = arith.constant 0 : i32
    %197 = arith.cmpi ne, %196, %c0_i32_86 : i32
    scf.if %197 {
      %c0_87 = arith.constant 0 : index
      %c0_88 = arith.constant 0 : index
      %198 = vector.load %arg4[%c0_87, %c0_88] : memref<1x32xf32, #tpu.memory_space<vmem>>, vector<1x32xf32>
      %c0_89 = arith.constant 0 : index
      %c0_90 = arith.constant 0 : index
      %199 = vector.load %arg5[%c0_89, %c0_90] : memref<1x32xf32, #tpu.memory_space<vmem>>, vector<1x32xf32>
      %cst_91 = arith.constant dense<0.000000e+00> : vector<8xf32>
      %200 = vector.multi_reduction <add>, %191, %cst_91 [1] : vector<8x32xf32> to vector<8xf32>
      %201 = vector.shape_cast %200 : vector<8xf32> to vector<8x1xf32>
      %cst_92 = arith.constant 3.200000e+01 : f32
      %202 = vector.broadcast %cst_92 : f32 to vector<8x1xf32>
      %203 = arith.divf %201, %202 : vector<8x1xf32>
      %204 = vector.broadcast %203 : vector<8x1xf32> to vector<8x32xf32>
      %205 = arith.subf %191, %204 : vector<8x32xf32>
      %206 = arith.mulf %205, %205 : vector<8x32xf32>
      %cst_93 = arith.constant dense<0.000000e+00> : vector<8xf32>
      %207 = vector.multi_reduction <add>, %206, %cst_93 [1] : vector<8x32xf32> to vector<8xf32>
      %208 = vector.shape_cast %207 : vector<8xf32> to vector<8x1xf32>
      %cst_94 = arith.constant 0.0322580636 : f32
      %209 = vector.broadcast %cst_94 : f32 to vector<8x1xf32>
      %210 = arith.mulf %208, %209 : vector<8x1xf32>
      %211 = math.sqrt %210 : vector<8x1xf32>
      %212 = vector.broadcast %198 : vector<1x32xf32> to vector<8x32xf32>
      %213 = arith.mulf %212, %205 : vector<8x32xf32>
      %cst_95 = arith.constant 9.99999997E-7 : f32
      %214 = vector.broadcast %cst_95 : f32 to vector<8x1xf32>
      %215 = arith.addf %211, %214 : vector<8x1xf32>
      %216 = tpu.reciprocal %215 {approx = true} : vector<8x1xf32> -> vector<8x1xf32>
      %217 = arith.mulf %215, %216 : vector<8x1xf32>
      %cst_96 = arith.constant 2.000000e+00 : f32
      %218 = vector.broadcast %cst_96 : f32 to vector<8x1xf32>
      %219 = arith.subf %218, %217 : vector<8x1xf32>
      %220 = arith.mulf %216, %219 : vector<8x1xf32>
      %221 = vector.broadcast %220 : vector<8x1xf32> to vector<8x32xf32>
      %222 = arith.mulf %213, %221 : vector<8x32xf32>
      %223 = vector.broadcast %199 : vector<1x32xf32> to vector<8x32xf32>
      %224 = arith.addf %222, %223 : vector<8x32xf32>
      %c0_97 = arith.constant 0 : index
      %c0_98 = arith.constant 0 : index
      %c0_99 = arith.constant 0 : index
      %225 = vector.load %arg18[%c0_97, %c0_98, %c0_99] : memref<1x8x32xf32, #tpu.memory_space<vmem>>, vector<1x8x32xf32>
      %226 = vector.shape_cast %225 : vector<1x8x32xf32> to vector<8x32xf32>
      %227 = vector.shape_cast %224 : vector<8x32xf32> to vector<1x8x32xf32>
      tpu.vector_store %arg18[%c0_97, %c0_98, %c0_99], %227 {strides = array<i32>} : memref<1x8x32xf32, #tpu.memory_space<vmem>>, vector<1x8x32xf32>,
    } else {
    }
    return
  }
  func.func @transform_0(%arg0: i32, %arg1: i32) -> (i32, i32, i32) {
    %c0_i32 = arith.constant 0 : i32
    %c0_i32_0 = arith.constant 0 : i32
    %c0_i32_1 = arith.constant 0 : i32
    return %arg0, %c0_i32, %c0_i32_0 : i32, i32, i32
  }
  func.func @transform_1(%arg0: i32, %arg1: i32) -> (i32, i32, i32) {
    %c0_i32 = arith.constant 0 : i32
    %c0_i32_0 = arith.constant 0 : i32
    %c0_i32_1 = arith.constant 0 : i32
    return %arg0, %c0_i32, %c0_i32_0 : i32, i32, i32
  }
  func.func @transform_2(%arg0: i32, %arg1: i32) -> (i32, i32) {
    %c0_i32 = arith.constant 0 : i32
    %c0_i32_0 = arith.constant 0 : i32
    %c0_i32_1 = arith.constant 0 : i32
    return %c0_i32, %c0_i32_0 : i32, i32
  }
  func.func @transform_3(%arg0: i32, %arg1: i32) -> (i32, i32) {
    %c0_i32 = arith.constant 0 : i32
    %c0_i32_0 = arith.constant 0 : i32
    %c0_i32_1 = arith.constant 0 : i32
    return %c0_i32, %c0_i32_0 : i32, i32
  }
  func.func @transform_4(%arg0: i32, %arg1: i32) -> (i32, i32, i32) {
    %c0_i32 = arith.constant 0 : i32
    %c0_i32_0 = arith.constant 0 : i32
    %c0_i32_1 = arith.constant 0 : i32
    return %arg1, %c0_i32, %c0_i32_0 : i32, i32, i32
  }
  func.func @transform_5(%arg0: i32, %arg1: i32) -> (i32, i32, i32) {
    %c0_i32 = arith.constant 0 : i32
    %c0_i32_0 = arith.constant 0 : i32
    %c0_i32_1 = arith.constant 0 : i32
    return %arg1, %c0_i32, %c0_i32_0 : i32, i32, i32
  }
  func.func @transform_6(%arg0: i32, %arg1: i32) -> (i32, i32, i32) {
    %c0_i32 = arith.constant 0 : i32
    %c0_i32_0 = arith.constant 0 : i32
    %c0_i32_1 = arith.constant 0 : i32
    return %arg1, %c0_i32, %c0_i32_0 : i32, i32, i32
  }
  func.func @transform_7(%arg0: i32, %arg1: i32) -> (i32, i32, i32) {
    %c0_i32 = arith.constant 0 : i32
    %c0_i32_0 = arith.constant 0 : i32
    %c0_i32_1 = arith.constant 0 : i32
    return %arg1, %c0_i32, %c0_i32_0 : i32, i32, i32
  }
  func.func @transform_8(%arg0: i32, %arg1: i32) -> (i32, i32, i32) {
    %c0_i32 = arith.constant 0 : i32
    %c0_i32_0 = arith.constant 0 : i32
    %c0_i32_1 = arith.constant 0 : i32
    return %arg1, %c0_i32, %c0_i32_0 : i32, i32, i32
  }
  func.func @transform_9(%arg0: i32, %arg1: i32) -> (i32, i32, i32) {
    %c0_i32 = arith.constant 0 : i32
    %c0_i32_0 = arith.constant 0 : i32
    %c0_i32_1 = arith.constant 0 : i32
    return %arg1, %c0_i32, %c0_i32_0 : i32, i32, i32
  }
  func.func @transform_10(%arg0: i32, %arg1: i32) -> (i32, i32, i32) {
    %c0_i32 = arith.constant 0 : i32
    %c0_i32_0 = arith.constant 0 : i32
    %c0_i32_1 = arith.constant 0 : i32
    return %arg1, %c0_i32, %c0_i32_0 : i32, i32, i32
  }
  func.func @transform_11(%arg0: i32, %arg1: i32) -> (i32, i32, i32) {
    %c0_i32 = arith.constant 0 : i32
    %c0_i32_0 = arith.constant 0 : i32
    %c0_i32_1 = arith.constant 0 : i32
    return %arg1, %c0_i32, %c0_i32_0 : i32, i32, i32
  }
  func.func @transform_12(%arg0: i32, %arg1: i32) -> (i32, i32, i32) {
    %c0_i32 = arith.constant 0 : i32
    %c0_i32_0 = arith.constant 0 : i32
    %c0_i32_1 = arith.constant 0 : i32
    return %arg1, %c0_i32, %c0_i32_0 : i32, i32, i32
  }
  func.func @transform_13(%arg0: i32, %arg1: i32) -> (i32, i32, i32) {
    %c0_i32 = arith.constant 0 : i32
    %c0_i32_0 = arith.constant 0 : i32
    %c0_i32_1 = arith.constant 0 : i32
    return %arg1, %c0_i32, %c0_i32_0 : i32, i32, i32
  }
  func.func @transform_14(%arg0: i32, %arg1: i32) -> (i32, i32, i32) {
    %c0_i32 = arith.constant 0 : i32
    %c0_i32_0 = arith.constant 0 : i32
    %c0_i32_1 = arith.constant 0 : i32
    return %arg1, %c0_i32, %c0_i32_0 : i32, i32, i32
  }
  func.func @transform_15(%arg0: i32, %arg1: i32) -> (i32, i32, i32) {
    %c0_i32 = arith.constant 0 : i32
    %c0_i32_0 = arith.constant 0 : i32
    %c0_i32_1 = arith.constant 0 : i32
    return %arg1, %c0_i32, %c0_i32_0 : i32, i32, i32
  }
  func.func @transform_16(%arg0: i32, %arg1: i32) -> (i32, i32, i32) {
    %c0_i32 = arith.constant 0 : i32
    %c0_i32_0 = arith.constant 0 : i32
    %c0_i32_1 = arith.constant 0 : i32
    return %arg0, %c0_i32, %c0_i32_0 : i32, i32, i32
  }
}

</mosaic_0001>

<bundles_post_ra>
// kernel: encoder_forward.1
= control target key start
LH: loop header
LB: loop body
LE: loop exit
PB: predicated region body
PF: predicated region fallthrough
CT: control target
= control target key end

     0   :  { %s2885_s0 = inlined_call_operand.hbm [shape: f32[2,8,32], index: 0, kind: input, shape index: {}]   ;;  %s2886_s1 = inlined_call_operand.hbm [shape: f32[2,1,8], index: 1, kind: input, shape index: {}]   ;;  %s2887_s2 = inlined_call_operand.hbm [shape: f32[1,32], index: 2, kind: input, shape index: {}]   ;;  %s2888_s3 = inlined_call_operand.vmem [shape: f32[1,32], index: 3, kind: input, shape index: {}]   ;;  %s2889_s4 = inlined_call_operand.vmem [shape: f32[2,32,96], index: 4, kind: input, shape index: {}]   ;;  %s2890_s5 = inlined_call_operand.vmem [shape: f32[2,1,96], index: 5, kind: input, shape index: {}]   ;;  %s2891_s6 = inlined_call_operand.vmem [shape: f32[2,32,32], index: 6, kind: input, shape index: {}]   ;;  %s2892_s7 = inlined_call_operand.hbm [shape: f32[2,1,32], index: 7, kind: input, shape index: {}]   ;;  %s2893_s8 = inlined_call_operand.vmem [shape: f32[2,32,64], index: 8, kind: input, shape index: {}]   ;;  %s2894_s9 = inlined_call_operand.hbm [shape: f32[2,1,64], index: 9, kind: input, shape index: {}]   ;;  %s2895_s10 = inlined_call_operand.vmem [shape: f32[2,64,32], index: 10, kind: input, shape index: {}]   ;;  %s2896_s11 = inlined_call_operand.hbm [shape: f32[2,1,32], index: 11, kind: input, shape index: {}]   ;;  %s2897_s12 = inlined_call_operand.vmem [shape: f32[2,1,32], index: 12, kind: input, shape index: {}]   ;;  %s2898_s13 = inlined_call_operand.hbm [shape: f32[2,1,32], index: 13, kind: input, shape index: {}]   ;;  %s2899_s14 = inlined_call_operand.vmem [shape: f32[2,1,32], index: 14, kind: input, shape index: {}]   ;;  %s2900_s15 = inlined_call_operand.vmem [shape: f32[2,1,32], index: 15, kind: input, shape index: {}]   ;;  %s2901_s16 = inlined_call_operand.hbm [shape: f32[2,8,32], index: 16, kind: output, shape index: {}]  }
   0x1   :  { %2920 = sst [smem:[#allocation35_spill]] %s2885_s0 }
   0x2   :  { %2921 = sst [smem:[#allocation36_spill]] %s2886_s1 }
   0x3   :  { %2922 = sst [smem:[#allocation37_spill]] %s2887_s2 }
   0x4   :  { %2923 = sst [smem:[#allocation38_spill]] %s2888_s3 }
   0x5   :  { %2924 = sst [smem:[#allocation39_spill]] %s2889_s4 }
   0x6   :  { %2925 = sst [smem:[#allocation40_spill]] %s2890_s5 }
   0x7   :  { %2926 = sst [smem:[#allocation41_spill]] %s2891_s6 }
   0x8   :  { %2927 = sst [smem:[#allocation42_spill]] %s2892_s7 }
   0x9   :  { %2928 = sst [smem:[#allocation43_spill]] %s2893_s8 }
   0xa   :  { %2929 = sst [smem:[#allocation44_spill]] %s2894_s9 }
   0xb   :  { %2930 = sst [smem:[#allocation45_spill]] %s2895_s10 }
   0xc   :  { %2931 = sst [smem:[#allocation46_spill]] %s2896_s11 }
   0xd   :  { %2932 = sst [smem:[#allocation47_spill]] %s2897_s12 }
   0xe   :  { %2933 = sst [smem:[#allocation48_spill]] %s2898_s13 }
   0xf   :  { %2934 = sst [smem:[#allocation49_spill]] %s2899_s14 }
  0x10   :  { %2935 = sst [smem:[#allocation50_spill]] %s2900_s15 }
  0x11   :  { %2936 = sst [smem:[#allocation51_spill]] %s2901_s16 }
  0x12   :  { %21 = vsyncpa [#allocation3], 0 }
  0x13   :  { %23 = vsyncpa [#allocation3 + $0x1], 0 }
  0x14   :  { %24 = vsyncpa [#allocation6], 0 }
  0x15   :  { %26 = vsyncpa [#allocation6 + $0x1], 0 }
  0x16   :  { %27 = vsyncpa [#allocation9], 0 }
  0x17   :  { %29 = vsyncpa [#allocation9 + $0x1], 0 }
  0x18   :  { %30 = vsyncpa [#allocation12], 0 }
  0x19   :  { %32 = vsyncpa [#allocation12 + $0x1], 0 }
  0x1a   :  { %33 = vsyncpa [#allocation4], 0 }
  0x1b   :  { %35 = vsyncpa [#allocation4 + $0x1], 0  ;;  %s2408_s21 = smov 0   ;;  %s2410_s22 = smov 0  }
  0x1c   :  { %s2412_s23 = smov 0   ;;  %s2414_s24 = smov 0  }
  0x1d   :  { %s2416_s25 = smov 0   ;;  %s2418_s26 = smov 0  }
  0x1e   :  { %s2420_s27 = smov 0   ;;  %s2422_s28 = smov 0  }
  0x1f   :  { %s2424_s29 = smov 0   ;;  %s2426_s30 = smov 0  }
  0x20   :  { %s2428_s0 = smov 0  }
  0x21 LB: > { %2937 = sst [smem:[#allocation21_spill]] %s2272_s23  ;;  %s2462_s17 = sadd.s32 4294967295, %s2304_s0   ;;  %s2304_s0 = sphi %s2428_s0, %s41_s0   ;;  %s2300_s30 = sphi %s2426_s30, %s3006_s30   ;;  %s2296_s29 = sphi %s2424_s29, %s3005_s29   ;;  %s2292_s28 = sphi %s2422_s28, %s3004_s28   ;;  %s2288_s27 = sphi %s2420_s27, %s3003_s27   ;;  %s2284_s26 = sphi %s2418_s26, %s3002_s26   ;;  %s2280_s25 = sphi %s2416_s25, %s3001_s25   ;;  %s2276_s24 = sphi %s2414_s24, %s3000_s24   ;;  %s2272_s23 = sphi %s2412_s23, %s2999_s23   ;;  %s2268_s22 = sphi %s2410_s22, %s3008_s22   ;;  %s2264_s21 = sphi %s2408_s21, %s3007_s21  }
  0x22   : > { %2938 = sst [smem:[#allocation22_spill]] %s2276_s24  ;;  %p245_p0 = scmp.ne.s32.totalorder %s2268_s22, %s2264_s21 }
  0x23   : > { %2939 = sst [smem:[#allocation23_spill]] %s2280_s25  ;;  %p2904_p1 = scmp.eq.s32.totalorder %s2462_s17, 0 }
  0x24   : > { %2940 = sst [smem:[#allocation24_spill]] %s2284_s26  ;;  %p477_p2 = scmp.eq.s32.totalorder %s2462_s17, 3 }
  0x25   : > { %2941 = sst [smem:[#allocation25_spill]] %s2288_s27  ;;  %p1719_p3 = scmp.ge.s32.totalorder %s2304_s0, 1 }
  0x26   : > { %2942 = sst [smem:[#allocation26_spill]] %s2292_s28  ;;  %p490_p4 = scmp.lt.s32.totalorder %s2304_s0, 5 }
  0x27   : > { %2943 = sst [smem:[#allocation27_spill]] %s2296_s29  ;;  %p2471_p5 = por %p245_p0, %p2904_p1 }
  0x28   : > { %2944 = sst [smem:[#allocation28_spill]] %s2300_s30  ;;  %p2475_p6 = pnand %p1719_p3, %p490_p4 }
  0x29   : > { %s2945_s18 = scalar_select %p2471_p5, 1, 0 }
  0x2a   : > { %s2948_s2 = sld [smem:[#allocation37_spill]]  ;;  %p1780_p7 = pneg %p2475_p6 }
  0x2b   : > { %2946 = sst [smem:[#allocation29_spill]] %s2945_s18  ;;  %s2306_s28 = smov [#allocation7]  }
  0x2c   : > { %s504_s3 = sshll.u32 %s2306_s28, 4  ;;  %p1781_p8 = pnand %p1780_p7, %p2904_p1  ;;  %s505_s3 = int_to_ptr.vmem [resolvable:$true] %s504_s3 }
  0x2d   : > { %s50_s15 = sadd.s32 1, %s2296_s29  ;;  %p68_p9 = scmp.eq.s32.totalorder %s2304_s0, 0 }
  0x2e   : > { %p2488_p10 = scmp.ge.s32.totalorder %s50_s15, 2  ;;  %s232_s21 = sadd.s32 1, %s2272_s23 }
  0x2f   : > { %p239_p11 = scmp.ne.s32.totalorder %s2272_s23, %s2268_s22  ;;  %p1808_p12 = scmp.lt.s32.totalorder %s2304_s0, 4 }
  0x30   : > { %s502_s16 = sshll.u32 %s2948_s2, 4  ;;  %s3010_s15 = smov (%p2488_p10, %s50_s15), 0  ;;  %s503_s16 = int_to_ptr.hbm [resolvable:$true] %s502_s16 }
  0x31   : > { %1783 = dma.hbm_to_vmem [thread:$0]  (!%p1781_p8), %s503_s16, 16, %s505_s3, [#allocation6]  }
  0x32   : > { %2950 = sst [smem:[#allocation30_spill]] %s3010_s15  ;;  %p241_p13 = por %p239_p11, %p68_p9 }
  0x33   : > { %s2503_s28 = sand.u32 1, %s2304_s0   ;;  %s229_s3 = ssub.s32 %s2296_s29, %s3010_s15 }
  0x34   : > { %p230_p0 = scmp.eq.s32.totalorder %s229_s3, 0  ;;  %s2508_s16 = sand.u32 1, %s2272_s23  }
  0x35   : > { %s2951_s7 = sld [smem:[#allocation42_spill]]  ;;  %s579_s6 = scalar_lea.vmem [#allocation8], %s2508_s16 }
  0x36   : > { %s2515_s10 = scalar_select %p230_p0, %s2272_s23, %s232_s21  }
  0x37   : > { %s586_s4 = sshll.u32 %s579_s6, 4  ;;  %p2520_p3 = pnand %p1808_p12, %p241_p13  ;;  %s587_s4 = int_to_ptr.vmem [resolvable:$true] %s586_s4 }
  0x38   : > { %2952 = sst [smem:[#allocation31_spill]] %s2515_s10  ;;  %s2906_s3 = scalar_lea.sflag [#allocation9], %s2503_s28 }
  0x39   : > { %s2954_s11 = sld [smem:[#allocation46_spill]]  ;;  %s2905_s10 = scalar_lea.sflag [#allocation12], %s2503_s28 }
  0x3a   : > { %s1718_s14 = sadd.s32 4294967294, %s2304_s0   ;;  %s53_s21 = sadd.s32 1, %s2300_s30 }
  0x3b   : > { %s582_s12 = scalar_lea.hbm %s2951_s7, %s2296_s29  ;;  %s629_s7 = scalar_lea.vmem [#allocation11], %s2508_s16 }
  0x3c   : > { %s584_s8 = sshll.u32 %s582_s12, 4  ;;  %s636_s15 = sshll.u32 %s629_s7, 4  ;;  %s585_s8 = int_to_ptr.hbm [resolvable:$true] %s584_s8  ;;  %s637_s15 = int_to_ptr.vmem [resolvable:$true] %s636_s15 }
  0x3d   : > { %1793 = dma.hbm_to_vmem [thread:$0]  (!%p2520_p3), %s585_s8, 16, %s587_s4, %s2906_s3  }
  0x3e   : > { %s3012_s21 = smov (!%p2488_p10, %s53_s21), %s2300_s30  ;;  %p67_p4 = scmp.ne.s32.totalorder %s2284_s26, %s2280_s25 }
  0x3f   : > { %s632_s6 = scalar_lea.hbm %s2954_s11, %s2296_s29  ;;  %p73_p7 = scmp.ne.s32.totalorder %s2280_s25, %s2276_s24 }
  0x40   : > { %s634_s12 = sshll.u32 %s632_s6, 4  ;;  %s60_s6 = sadd.s32 1, %s2284_s26  ;;  %s635_s12 = int_to_ptr.hbm [resolvable:$true] %s634_s12 }
  0x41   : > { %1799 = dma.hbm_to_vmem [thread:$0]  (!%p2520_p3), %s635_s12, 16, %s637_s15, %s2905_s10  }
  0x42   : > { %p55_p8 = scmp.ge.s32.totalorder %s3012_s21, 2  ;;  %p483_p11 = scmp.eq.s32.totalorder %s1718_s14, 3 }
  0x43   : > { %p2551_p13 = por %p68_p9, %p67_p4  ;;  %p2557_p0 = por %p2904_p1, %p73_p7 }
  0x44   : > { %s3014_s21 = smov (%p55_p8, %s3012_s21), 0  ;;  %p2565_p10 = por %p477_p2, %p67_p4 }
  0x45   : > { %2957 = sst [smem:[#allocation32_spill]] %s3014_s21  ;;  %p2569_p9 = por %p483_p11, %p73_p7 }
  0x46   : > { %s2958_s8 = scalar_select %p2565_p10, 1, 0 }
  0x47   : > { %s57_s20 = ssub.s32 %s2300_s30, %s3014_s21  ;;  %s518_s12 = sand.u32 1, %s2284_s26  }
  0x48   : > { %2959 = sst [smem:[#allocation33_spill]] %s2958_s8  ;;  %p58_p1 = scmp.eq.s32.totalorder %s57_s20, 0 }
  0x49   : > { %s1722_s14 = sshll.u32 %s518_s12, 3  ;;  %s1723_s10 = sshll.u32 %s2300_s30, 3 }
  0x4a   : > { %s2578_s3 = scalar_select %p58_p1, %s2284_s26, %s60_s6  }
  0x4b   : > { %s2962_s24 = sld [smem:[#allocation35_spill]]  ;;  %s522_s18 = scalar_lea.vmem [#allocation2], %s1722_s14 }
  0x4c   : > { %2961 = sst [smem:[#allocation34_spill]] %s2578_s3  ;;  %s530_s8 = sshll.u32 %s522_s18, 4  ;;  %s531_s8 = int_to_ptr.vmem [resolvable:$true] %s530_s8 }
  0x4d   : > { %p1785_p2 = pnand %p1808_p12, %p2551_p13  ;;  %s2963_s1 = sld [smem:[#allocation36_spill]] }
  0x4e   : > { %s519_s11 = scalar_lea.sflag [#allocation3], %s518_s12  ;;  %s538_s23 = scalar_lea.sflag [#allocation6], %s2503_s28 }
  0x4f   : > { %s2964_s9 = sld [smem:[#allocation44_spill]]  ;;  %s604_s4 = scalar_lea.vmem [#allocation10], %s2508_s16 }
  0x50   : > { %s611_s14 = sshll.u32 %s604_s4, 4  ;;  %s2966_s13 = sld [smem:[#allocation48_spill]]  ;;  %s612_s14 = int_to_ptr.vmem [resolvable:$true] %s611_s14 }
  0x51   : > { %s526_s5 = scalar_lea.hbm %s2962_s24, %s1723_s10 }
  0x52   : > { %s528_s27 = sshll.u32 %s526_s5, 4  ;;  %s540_s5 = scalar_lea.vmem [#allocation5], %s518_s12  ;;  %s529_s27 = int_to_ptr.hbm [resolvable:$true] %s528_s27 }
  0x53   : > { %s543_s6 = scalar_lea.hbm %s2963_s1, %s2300_s30  ;;  %s547_s10 = sshll.u32 %s540_s5, 4  ;;  %s548_s10 = int_to_ptr.vmem [resolvable:$true] %s547_s10 }
  0x54   : > { %s545_s3 = sshll.u32 %s543_s6, 4  ;;  %s2965_s6 = scalar_lea.sflag [#allocation9], %s2503_s28  ;;  %s546_s3 = int_to_ptr.hbm [resolvable:$true] %s545_s3 }
  0x55   : > { %1787 = dma.hbm_to_vmem [thread:$0]  (!%p1785_p2), %s529_s27, 128, %s531_s8, %s519_s11  }
  0x56   : > { %1790 = dma.hbm_to_vmem [thread:$0]  (!%p1785_p2), %s546_s3, 16, %s548_s10, %s538_s23  }
  0x57   : > { %s607_s21 = scalar_lea.hbm %s2964_s9, %s2296_s29  ;;  %s655_s12 = scalar_lea.hbm %s2966_s13, %s2296_s29 }
  0x58   : > { %s609_s20 = sshll.u32 %s607_s21, 4  ;;  %s652_s11 = scalar_lea.vmem [#allocation13], %s2508_s16  ;;  %s610_s20 = int_to_ptr.hbm [resolvable:$true] %s609_s20 }
  0x59   : > { %1796 = dma.hbm_to_vmem [thread:$0]  (!%p2520_p3), %s610_s20, 16, %s612_s14, %s2965_s6  }
  0x5a   : > { %s659_s5 = sshll.u32 %s652_s11, 4  ;;  %s657_s1 = sshll.u32 %s655_s12, 4  ;;  %s660_s5 = int_to_ptr.vmem [resolvable:$true] %s659_s5  ;;  %s658_s1 = int_to_ptr.hbm [resolvable:$true] %s657_s1 }
  0x5b   : > { %s2967_s3 = scalar_lea.sflag [#allocation12], %s2503_s28  ;;  %680 = sbr.rel (%p2475_p6) target bundleno = 2699 (0xa8b), region = 84 }
  0x5c   : > { %1802 = dma.hbm_to_vmem [thread:$0]  (!%p2520_p3), %s658_s1, 16, %s660_s5, %s2967_s3  }
  0x5d   : > { %s2613_s10 = sand.u32 (!%p2475_p6), 1, %s2280_s25  }
  0x5e   : > { %s2915_s23 = sshll.u32 (!%p2475_p6), %s2613_s10, 3  ;;  %s683_s24 = scalar_lea.sflag (!%p2475_p6), [#allocation3], %s2613_s10 }
  0x5f   : > { %s2619_s16 = scalar_lea.vmem (!%p2475_p6), [#allocation2], %s2915_s23 }
  0x60   : > { %2239 = dma.done.wait (%p2557_p0), %s683_s24, 128  }
  0x61   : > { %2241 = vsyncadd (%p2557_p0), %s683_s24, 4294967168  ;;  %s692_s1 = sand.u32 1, %s2462_s17  }
  0x62   : > { %s693_s19 = scalar_lea.sflag [#allocation6], %s692_s1 }
  0x63   : > { %2243 = dma.done.wait (%p2557_p0), %s693_s19, 16  }
  0x64   : > { %2245 = vsyncadd (%p2557_p0), %s693_s19, 4294967280  ;;  %p2968_p1 = scmp.eq.s32.totalorder %s2462_s17, 0 }
  0x66   : > { %2247 = dma.done.wait (%p2968_p1), [#allocation6], 16   ;;  %p2969_p6 = pmov %p2968_p1 }
  0x67   : > { %s2636_s18 = sand.u32 1, %s2268_s22   ;;  %s707_s21 = scalar_lea.sflag [#allocation9], %s692_s1 }
  0x68   : > { %2249 = vsyncadd (%p2969_p6), [#allocation6], 4294967280 }
  0x69   : > { %2251 = dma.done.wait (%p2471_p5), %s707_s21, 32  }
  0x6a   : > { %2253 = vsyncadd (%p2471_p5), %s707_s21, 4294967264  ;;  %s725_s14 = scalar_lea.sflag [#allocation12], %s692_s1 }
  0x6b   : > { %2255 = dma.done.wait (%p2471_p5), %s725_s14, 32  }
  0x6c   : > { %2257 = vsyncadd (%p2471_p5), %s725_s14, 4294967264  ;;  %s2971_s17 = sld [smem:[#allocation25_spill]]  ;;  %s2980_s7 = sshll.u32 %s2613_s10, 3 }
  0x6d   : > { %s2973_s1 = sld [smem:[#allocation39_spill]] }
  0x6e   : > { %s2974_s14 = sld [smem:[#allocation41_spill]] }
  0x6f   : > { %s2975_s28 = sld [smem:[#allocation43_spill]] }
  0x70   : > { %s2976_s8 = sld [smem:[#allocation45_spill]] }
  0x71   : > { %s2977_s24 = sld [smem:[#allocation47_spill]] }
  0x72   : > { %p838_p12 = scmp.lt.s32.totalorder %s2971_s17, 1  ;;  %s2978_s2 = sld [smem:[#allocation49_spill]] }
  0x73   : > { %s2979_s25 = sld [smem:[#allocation50_spill]]  ;;  %p1736_p5 = scmp.ne.s32.totalorder %s2971_s17, 0 }
  0x74   : > { %s2651_s6 = scalar_select %p838_p12, %s2971_s17, 1 }
  0x76   : > { %s1758_s27 = sshll.u32 %s2651_s6, 5  ;;  %s1761_s9 = sshll.u32 %s2651_s6, 6 }
  0x77   : > { %s2661_s19 = scalar_lea.vmem %s2973_s1, %s1758_s27  ;;  %s2666_s20 = scalar_lea.vmem %s2974_s14, %s1758_s27 }
  0x78   : > { %s2671_s23 = scalar_lea.vmem %s2975_s28, %s1758_s27  ;;  %s2677_s12 = scalar_lea.vmem %s2976_s8, %s1761_s9 }
  0x79   : > { %s863_s1 = scalar_lea.vmem %s2977_s24, %s2651_s6  ;;  %s866_s21 = scalar_lea.vmem %s2978_s2, %s2651_s6 }
  0x7a   : > { %s869_s4 = scalar_lea.vmem %s2979_s25, %s2651_s6  ;;  %s736_s28 = scalar_lea.vmem [#allocation13], %s2636_s18 }
  0x7b   : > { %s2694_s27 = scalar_lea.vmem [#allocation14], %s2980_s7  ;;  %873 = sbr.rel (%p1736_p5) target bundleno = 130 (0x82), region = 116 }
  0x80   : > { %v874_v0 = vld [vmem:[%s2619_s16] sm:$0xff]  ;;  %vm875_vm0 = vcmask 261120  }
  0x81   : > { %876 = vst.msk [vmem:[%s2694_s27] sm:$0xff] %vm875_vm0, %v874_v0 }
  0x82 PF: > { %vm882_vm1 = vcmask 261120   ;;  %v2307_v3 = vmov 32.0   ;;  %v929_v15 = vld [vmem:[%s2661_s19 + $0x18] sm:$0xff]  ;;  %v928_v16 = vld [vmem:[%s2661_s19 + $0x10] sm:$0xff]  ;;  %v927_v17 = vld [vmem:[%s2661_s19 + $0x8] sm:$0xff]  ;;  %s2982_s30 = sld [smem:[#allocation40_spill]] }
  0x83   : > { %1924 = vrcp.f32 %v2307_v3  ;;  %949 = vmatpush.msra.mxu0 %v929_v15  ;;  %v926_v18 = vld [vmem:[%s2661_s19] sm:$0xff]  ;;  %s2308_s17 = smov 64   ;;  %s2309_s5 = smov 120   ;;  %vm960_vm5 = vcmask 64512   ;;  %v2313_v49 = vmov 0   ;;  %vm1249_vm8 = vcmask 130048  }
  0x84   : > { %v1916_v33 = vld [vmem:[%s863_s1] ss:$0 sm:$0xff]  ;;  %s2310_s19 = smov 96   ;;  %s2311_s8 = smov 72   ;;  %vm1251_vm9 = vcmask 195584   ;;  %vm1364_vm12 = vcmask 523264  }
  0x85   : > { %950 = vmatpush.msra.mxu0 %v928_v16  ;;  %v1917_v38 = vld [vmem:[%s736_s28] ss:$0 sm:$0xff]  ;;  %s2312_s11 = smov 88   ;;  %s2984_s3 = scalar_lea.vmem [#allocation5], %s2613_s10 }
  0x86   : > { %v878_v48 = vld [vmem:[%s2984_s3] sm:$0x1]  ;;  %s2314_s24 = smov 56   ;;  %s2315_s1 = smov 80  }
  0x87   : > { %951 = vmatpush.msra.mxu0 %v927_v17  ;;  %vm879_vm6 = vcmp.eq.f32.partialorder %v878_v48, 0.0  ;;  %s2316_s2 = smov 104   ;;  %s2317_s14 = smov 112  }
  0x88   : > { %v2700_v1 = vld [vmem:[%s2694_s27] sm:$0xff]  ;;  %s2983_s16 = scalar_lea.vmem %s2982_s30, %s2651_s6  ;;  %v985_v50 = vsel %vm879_vm6, 1, %v2313_v49  ;;  %s2318_s28 = smov 48  }
  0x89   : > { %v883_v2 = vsel %vm882_vm1, %v2700_v1, 0.0  ;;  %v1925_v4 = vpop.eup %1924  ;;  %952 = vmatpush.msra.mxu0 %v926_v18  ;;  %v1918_v41 = vld [vmem:[%s2983_s16] ss:$0 sm:$0xff]  ;;  %v986_v51 = vperm.slane %v985_v50, 0  ;;  %s2319_s7 = smov 8   ;;  %s2320_s9 = smov 40  }
  0x8a   : > { %884 = vadd.xlane.f32.xlu0 %v883_v2  ;;  %v887_v5 = vmul.f32 32.0, %v1925_v4  ;;  %vm891_vm2 = vweird.f32 %v1925_v4  ;;  %s2321_s13 = smov 16   ;;  %s2322_s25 = smov 24  }
  0x8b   : > { %vm2740_vm7 = vcmp.eq.s32.totalorder %v986_v51, 1  ;;  %s2987_s26 = scalar_lea.vmem [#allocation8], %s2636_s18  ;;  %s2991_s6 = scalar_lea.vmem [#allocation11], %s2636_s18 }
  0x8c   : > { %v888_v6 = vsub.f32 1.0, %v887_v5 }
  0x8e   : > { %v889_v7 = vmul.f32 %v1925_v4, %v888_v6 }
  0x90   : > { %v890_v8 = vadd.f32 %v1925_v4, %v889_v7 }
  0x92   : > { %v2704_v9 = vsel %vm891_vm2, %v1925_v4, %v890_v8 }
  0xfd   : > { %v885_v10 = vpop.xlane.xlu0 %884 }
  0xfe   : > { %v893_v11 = vmul.f32 %v2704_v9, %v885_v10 }
 0x100   : > { %v894_v12 = vsub.f32 %v2700_v1, %v893_v11 }
 0x102   : > { %v895_v13 = vmul.f32 %v894_v12, %v894_v12  ;;  %v915_v36 = vmul.f32 %v1916_v33, %v894_v12 }
 0x104   : > { %v896_v14 = vsel %vm882_vm1, %v895_v13, 0.0 }
 0x105   : > { %897 = vadd.xlane.f32.xlu0 %v896_v14 }
 0x178   : > { %v898_v19 = vpop.xlane.xlu0 %897 }
 0x179   : > { %v899_v20 = vmul.f32 0.032258064, %v898_v19 }
 0x17b   : > { %1926 = vrsqrt.f32 %v899_v20  ;;  %vm907_vm3 = vcmp.eq.f32.partialorder %v899_v20, inf  ;;  %v910_v28 = vand.u32 2147483648, %v899_v20  ;;  %vm909_vm4 = vcmp.eq.f32.partialorder %v899_v20, 0.0 }
 0x181   : > { %v1927_v21 = vpop.eup %1926 }
 0x182   : > { %v901_v22 = vmul.f32 %v1927_v21, %v899_v20 }
 0x184   : > { %v902_v23 = vmul.f32 %v1927_v21, %v901_v22 }
 0x186   : > { %v903_v24 = vmul.f32 0.5, %v902_v23 }
 0x188   : > { %v904_v25 = vsub.f32 1.5, %v903_v24 }
 0x18a   : > { %v905_v26 = vmul.f32 %v1927_v21, %v904_v25 }
 0x18c   : > { %v906_v27 = vmul.f32 %v905_v26, %v899_v20 }
 0x18e   : > { %v908_v29 = vsel %vm907_vm3, %v899_v20, %v906_v27 }
 0x18f   : > { %v911_v30 = vsel %vm909_vm4, %v910_v28, %v908_v29 }
 0x190   : > { %v916_v31 = vadd.f32 1e-06, %v911_v30 }
 0x192   : > { %1928 = vrcp.f32 %v916_v31 }
 0x198   : > { %v1929_v32 = vpop.eup %1928 }
 0x199   : > { %v918_v34 = vmul.f32 %v1929_v32, %v916_v31 }
 0x19b   : > { %v919_v35 = vsub.f32 2.0, %v918_v34 }
 0x19d   : > { %v920_v37 = vmul.f32 %v1929_v32, %v919_v35 }
 0x19f   : > { %v921_v39 = vmul.f32 %v920_v37, %v915_v36 }
 0x1a1   : > { %v925_v40 = vadd.f32 %v1917_v38, %v921_v39 }
 0x1a3   : > { %1737 = vmatmul.msk.f32.vlgmr.msra.gmra.mxu0 %vm882_vm1, %v925_v40 }
 0x220   : > { %v954_v42 = vpop.f32.mrf.mxu0 }
 0x221   : > { %v2726_v43 = vadd.f32 %v1918_v41, %v954_v42 }
 0x223   : > { %1003 = vrot.lane.b32.xlu0 %v2726_v43, %s2308_s17  ;;  %1029 = vrot.lane.b32.xlu2 %v2726_v43, %s2309_s5 }
 0x224   : > { %958 = vrot.lane.b32.xlu1 %v2726_v43, %s2310_s19 }
 0x22b   : > { %1169 = vrot.lane.b32.xlu0 %v2726_v43, %s2311_s8 }
 0x22c   : > { %1031 = vrot.lane.b32.xlu1 %v2726_v43, %s2312_s11 }
 0x27d   : > { %v1030_v47 = vpop.permute.xlu2 %1029 }
 0x295   : > { %v1004_v44 = vpop.permute.xlu0 %1003 }
 0x296   : > { %v959_v45 = vpop.permute.xlu1 %958  ;;  %1024 = vmatpush.msra.mxu2 %v1004_v44 }
 0x297   : > { %1738 = vmatpush.xpose.msk.msra.mxu1 %vm960_vm5, %v959_v45 }
 0x29a   : > { %1739 = vmatmul.msk.f32.vlgmr.msra.gmra.mxu1 %vm960_vm5, %v2726_v43 }
 0x29d   : > { %v1170_v62 = vpop.permute.xlu0 %1169 }
 0x29e   : > { %v1032_v46 = vpop.permute.xlu1 %1031 }
 0x29f   : > { %1741 = vmatpush.xpose.msk.msra.mxu3 %vm960_vm5, %v1032_v46 }
 0x2a2   : > { %1742 = vmatmul.msk.f32.vlgmr.msra.gmra.mxu3 %vm960_vm5, %v1030_v47 }
 0x317   : > { %v982_v53 = vpop.f32.mrf.mxu1 }
 0x318   : > { %v988_v54 = vsel %vm2740_vm7, -1e+09, %v982_v53 }
 0x319   : > { %v989_v55 = vsel %vm960_vm5, %v988_v54, -inf }
 0x31a   : > { %990 = vmax.xlane.f32.xlu2 %v989_v55 }
 0x325   : > { %v1054_v56 = vpop.f32.mrf.mxu3 }
 0x326   : > { %v1057_v57 = vsel %vm2740_vm7, -1e+09, %v1054_v56 }
 0x327   : > { %v1058_v58 = vsel %vm960_vm5, %v1057_v57, -inf }
 0x328   : > { %1059 = vmax.xlane.f32.xlu0 %v1058_v58  ;;  %v1256_v58 = vld [vmem:[%s2666_s20 + $0x18] sm:$0xff] }
 0x332   : > { %1072 = vrot.lane.b32.xlu2 %v2726_v43, %s2314_s24 }
 0x33c   : > { %1100 = vrot.lane.b32.xlu0 %v2726_v43, %s2315_s1 }
 0x38d   : > { %v991_v59 = vpop.xlane.xlu2 %990 }
 0x38e   : > { %v992_v60 = vsub.f32 %v988_v54, %v991_v59  ;;  %v1255_v59 = vld [vmem:[%s2666_s20 + $0x10] sm:$0xff] }
 0x390   : > { %v993_v61 = vmul.f32 1.442695, %v992_v60  ;;  %v1254_v60 = vld [vmem:[%s2666_s20 + $0x8] sm:$0xff] }
 0x392   : > { %1930 = vpow2.f32 %v993_v61  ;;  %v1253_v61 = vld [vmem:[%s2666_s20] sm:$0xff] }
 0x395   : > { %v1073_v63 = vpop.permute.xlu2 %1072 }
 0x396   : > { %1093 = vmatpush.msrb.mxu2 %v1073_v63 }
 0x398   : > { %v1931_v0 = vpop.eup %1930 }
 0x399   : > { %v995_v2 = vsel %vm960_vm5, %v1931_v0, 0.0 }
 0x39a   : > { %996 = vadd.xlane.f32.xlu1 %v995_v2 }
 0x39b   : > { %v1060_v3 = vpop.xlane.xlu0 %1059 }
 0x39c   : > { %v1061_v4 = vsub.f32 %v1057_v57, %v1060_v3 }
 0x39e   : > { %v1062_v5 = vmul.f32 1.442695, %v1061_v4 }
 0x3a0   : > { %1932 = vpow2.f32 %v1062_v5  ;;  %v1919_v5 = vld [vmem:[%s2987_s26] ss:$0 sm:$0xff] }
 0x3a6   : > { %v1933_v6 = vpop.eup %1932 }
 0x3a7   : > { %v1064_v7 = vsel %vm960_vm5, %v1933_v6, 0.0 }
 0x3a8   : > { %1065 = vadd.xlane.f32.xlu0 %v1064_v7 }
 0x3ae   : > { %v1101_v8 = vpop.permute.xlu0 %1100 }
 0x3af   : > { %1744 = vmatpush.xpose.msk.msrb.mxu1 %vm960_vm5, %v1101_v8 }
 0x3b3   : > { %1167 = vrot.lane.b32.xlu1 %v2726_v43, %s2316_s2  ;;  %1272 = vmatpush.msra.mxu1 %v1256_v58 }
 0x3b5   : > { %1273 = vmatpush.msra.mxu1 %v1255_v59 }
 0x3b7   : > { %1274 = vmatpush.msra.mxu1 %v1254_v60 }
 0x3b9   : > { %1275 = vmatpush.msra.mxu1 %v1253_v61 }
 0x3bc   : > { %1098 = vrot.lane.b32.xlu0 %v2726_v43, %s2317_s14 }
 0x40d   : > { %v997_v10 = vpop.xlane.xlu1 %996 }
 0x40e   : > { %1934 = vrcp.f32 %v997_v10 }
 0x414   : > { %v1935_v11 = vpop.eup %1934 }
 0x415   : > { %v999_v12 = vmul.f32 %v1935_v11, %v997_v10 }
 0x417   : > { %v1000_v13 = vsub.f32 2.0, %v999_v12 }
 0x419   : > { %v1001_v14 = vmul.f32 %v1935_v11, %v1000_v13 }
 0x41b   : > { %v1066_v15 = vpop.xlane.xlu0 %1065  ;;  %v1002_v16 = vmul.f32 %v1931_v0, %v1001_v14 }
 0x41c   : > { %1936 = vrcp.f32 %v1066_v15 }
 0x41d   : > { %1740 = vmatmul.msk.f32.vlgmr.msra.gmra.mxu2 %vm960_vm5, %v1002_v16  ;;  %v1327_v16 = vld [vmem:[%s2671_s23 + $0x18] sm:$0xff] }
 0x41e   : > { %1747 = vmatpush.xpose.msk.msra.mxu2 %vm960_vm5, %v1170_v62 }
 0x422   : > { %v1937_v17 = vpop.eup %1936 }
 0x423   : > { %v1068_v18 = vmul.f32 %v1937_v17, %v1066_v15 }
 0x425   : > { %v1069_v19 = vsub.f32 2.0, %v1068_v18  ;;  %v1168_v23 = vpop.permute.xlu1 %1167  ;;  %v1324_v18 = vld [vmem:[%s2671_s23] sm:$0xff] }
 0x427   : > { %v1070_v20 = vmul.f32 %v1937_v17, %v1069_v19  ;;  %v1326_v17 = vld [vmem:[%s2671_s23 + $0x10] sm:$0xff] }
 0x429   : > { %v1071_v21 = vmul.f32 %v1933_v6, %v1070_v20 }
 0x42b   : > { %1743 = vmatmul.msk.f32.vlgmr.msrb.gmra.mxu2 %vm960_vm5, %v1071_v21 }
 0x42e   : > { %v1099_v22 = vpop.permute.xlu0 %1098 }
 0x42f   : > { %1745 = vmatmul.msk.f32.vlgmr.msrb.gmra.mxu1 %vm960_vm5, %v1099_v22 }
 0x433   : > { %1748 = vmatmul.msk.f32.vlgmr.msra.gmra.mxu2 %vm960_vm5, %v1168_v23  ;;  %v1363_v23 = vld [vmem:[%s2677_s12 + $0x38] sm:$0xff] }
 0x434   : > { %1376 = vmatpush.msrb.mxu0 %v1363_v23 }
 0x4a0   : > { %v2762_v24 = vpop.f32.mrf.mxu2 }
 0x4ac   : > { %v1123_v25 = vpop.f32.mrf.mxu1 }
 0x4ad   : > { %v1126_v26 = vsel %vm2740_vm7, -1e+09, %v1123_v25 }
 0x4ae   : > { %v1095_v27 = vpop.f32.mrf.mxu2  ;;  %v1127_v28 = vsel %vm960_vm5, %v1126_v26, -inf }
 0x4af   : > { %1128 = vmax.xlane.f32.xlu2 %v1127_v28  ;;  %v1360_v28 = vld [vmem:[%s2677_s12 + $0x20] sm:$0xff] }
 0x4b6   : > { %v1192_v29 = vpop.f32.mrf.mxu2 }
 0x4b7   : > { %v1195_v30 = vsel %vm2740_vm7, -1e+09, %v1192_v29 }
 0x4b8   : > { %v1196_v31 = vsel %vm960_vm5, %v1195_v30, -inf }
 0x4b9   : > { %1197 = vmax.xlane.f32.xlu0 %v1196_v31 }
 0x4cd   : > { %1141 = vrot.lane.b32.xlu0 %v2726_v43, %s2318_s28 }
 0x522   : > { %v1129_v32 = vpop.xlane.xlu2 %1128 }
 0x523   : > { %v1130_v33 = vsub.f32 %v1126_v26, %v1129_v32  ;;  %v1361_v26 = vld [vmem:[%s2677_s12 + $0x28] sm:$0xff] }
 0x525   : > { %v1131_v34 = vmul.f32 1.442695, %v1130_v33 }
 0x527   : > { %1938 = vpow2.f32 %v1131_v34 }
 0x52c   : > { %v1198_v35 = vpop.xlane.xlu0 %1197 }
 0x52d   : > { %v1939_v36 = vpop.eup %1938  ;;  %v1199_v37 = vsub.f32 %v1195_v30, %v1198_v35  ;;  %v1359_v30 = vld [vmem:[%s2677_s12 + $0x18] sm:$0xff] }
 0x52e   : > { %v1133_v38 = vsel %vm960_vm5, %v1939_v36, 0.0 }
 0x52f   : > { %v1200_v39 = vmul.f32 1.442695, %v1199_v37  ;;  %1134 = vadd.xlane.f32.xlu1 %v1133_v38  ;;  %v1920_v38 = vld [vmem:[%s866_s21] ss:$0 sm:$0xff]  ;;  %s2990_s21 = scalar_lea.vmem [#allocation10], %s2636_s18 }
 0x531   : > { %1940 = vpow2.f32 %v1200_v39 }
 0x537   : > { %v1941_v40 = vpop.eup %1940 }
 0x538   : > { %v1202_v41 = vsel %vm960_vm5, %v1941_v40, 0.0 }
 0x539   : > { %1203 = vadd.xlane.f32.xlu2 %v1202_v41 }
 0x53f   : > { %v1142_v42 = vpop.permute.xlu0 %1141 }
 0x540   : > { %1162 = vmatpush.msrb.mxu3 %v1142_v42 }
 0x542   : > { %1347 = vmatpush.msra.mxu3 %v1327_v16 }
 0x544   : > { %1348 = vmatpush.msra.mxu3 %v1326_v17 }
 0x548   : > { %1237 = vrot.lane.b32.xlu1 %v1095_v27, %s2319_s7 }
 0x551   : > { %1210 = vrot.lane.b32.xlu2 %v2726_v43, %s2320_s9 }
 0x5a2   : > { %v1135_v44 = vpop.xlane.xlu1 %1134 }
 0x5a3   : > { %1942 = vrcp.f32 %v1135_v44 }
 0x5a9   : > { %v1943_v45 = vpop.eup %1942 }
 0x5aa   : > { %v1137_v46 = vmul.f32 %v1943_v45, %v1135_v44  ;;  %v1921_v44 = vld [vmem:[%s869_s4] ss:$0 sm:$0xff]  ;;  %s2992_s4 = sld [smem:[#allocation25_spill]] }
 0x5ac   : > { %v1138_v47 = vsub.f32 2.0, %v1137_v46  ;;  %v1204_v48 = vpop.xlane.xlu2 %1203 }
 0x5ad   : > { %1944 = vrcp.f32 %v1204_v48 }
 0x5ae   : > { %v1139_v49 = vmul.f32 %v1943_v45, %v1138_v47  ;;  %v1358_v47 = vld [vmem:[%s2677_s12 + $0x10] sm:$0xff] }
 0x5b0   : > { %v1140_v50 = vmul.f32 %v1939_v36, %v1139_v49  ;;  %v1356_v49 = vld [vmem:[%s2677_s12] sm:$0xff]  ;;  %p1753_p3 = scmp.ne.s32.totalorder %s2992_s4, 1 }
 0x5b1   : > { %s2993_s5 = sld [smem:[#allocation38_spill]] (!%p1753_p3) }
 0x5b2   : > { %1746 = vmatmul.msk.f32.vlgmr.msrb.gmra.mxu3 %vm960_vm5, %v1140_v50  ;;  %v1922_v50 = vld [vmem:[%s2990_s21] ss:$0 sm:$0xff] }
 0x5b3   : > { %v1945_v51 = vpop.eup %1944 }
 0x5b4   : > { %v1206_v52 = vmul.f32 %v1945_v51, %v1204_v48  ;;  %v1211_v53 = vpop.permute.xlu2 %1210  ;;  %v1357_v48 = vld [vmem:[%s2677_s12 + $0x8] sm:$0xff] }
 0x5b5   : > { %1231 = vmatpush.msrb.mxu2 %v1211_v53 }
 0x5b6   : > { %v1207_v54 = vsub.f32 2.0, %v1206_v52 }
 0x5b8   : > { %v1208_v43 = vmul.f32 %v1945_v51, %v1207_v54  ;;  %v1923_v54 = vld [vmem:[%s2991_s6] ss:$0 sm:$0xff] }
 0x5ba   : > { %v1209_v55 = vmul.f32 %v1941_v40, %v1208_v43  ;;  %v1238_v63 = vpop.permute.xlu1 %1237 }
 0x5bb   : > { %v1248_v0 = vsel %vm960_vm5, %v2762_v24, %v1238_v63  ;;  %v1362_v24 = vld [vmem:[%s2677_s12 + $0x30] sm:$0xff] }
 0x5bc   : > { %1749 = vmatmul.msk.f32.vlgmr.msrb.gmra.mxu2 %vm960_vm5, %v1209_v55  ;;  %1377 = vmatpush.msrb.mxu0 %v1362_v24 }
 0x5be   : > { %1378 = vmatpush.msrb.mxu0 %v1361_v26 }
 0x5c0   : > { %1379 = vmatpush.msrb.mxu0 %v1360_v28 }
 0x5c2   : > { %1380 = vmatpush.msrb.mxu0 %v1359_v30 }
 0x5c4   : > { %1381 = vmatpush.msrb.mxu0 %v1358_v47 }
 0x5c6   : > { %1382 = vmatpush.msrb.mxu0 %v1357_v48 }
 0x5c8   : > { %1383 = vmatpush.msrb.mxu0 %v1356_v49 }
 0x635   : > { %v1164_v56 = vpop.f32.mrf.mxu3 }
 0x636   : > { %1241 = vrot.lane.b32.xlu0 %v1164_v56, %s2321_s13 }
 0x63f   : > { %v1233_v57 = vpop.f32.mrf.mxu2 }
 0x640   : > { %1245 = vrot.lane.b32.xlu0 %v1233_v57, %s2322_s25 }
 0x6a8   : > { %v1242_v62 = vpop.permute.xlu0 %1241 }
 0x6a9   : > { %v1250_v2 = vsel %vm1249_vm8, %v1248_v0, %v1242_v62 }
 0x6b2   : > { %v1246_v3 = vpop.permute.xlu0 %1245 }
 0x6b3   : > { %v1252_v4 = vsel %vm1251_vm9, %v1250_v2, %v1246_v3 }
 0x6b4   : > { %1750 = vmatmul.msk.f32.vlgmr.msra.gmra.mxu1 %vm882_vm1, %v1252_v4 }
 0x731   : > { %v1277_v6 = vpop.f32.mrf.mxu1 }
 0x732   : > { %v1280_v7 = vadd.f32 %v1277_v6, %v2700_v1  ;;  %v1325_v1 = vld [vmem:[%s2671_s23 + $0x8] sm:$0xff] }
 0x733   : > { %1349 = vmatpush.msra.mxu3 %v1325_v1 }
 0x734   : > { %v2786_v8 = vadd.f32 %v1919_v5, %v1280_v7 }
 0x735   : > { %1350 = vmatpush.msra.mxu3 %v1324_v18 }
 0x736   : > { %v1288_v10 = vsel %vm882_vm1, %v2786_v8, 0.0 }
 0x737   : > { %1289 = vadd.xlane.f32.xlu2 %v1288_v10 }
 0x7aa   : > { %v1290_v11 = vpop.xlane.xlu2 %1289 }
 0x7ab   : > { %v1291_v12 = vmul.f32 %v1290_v11, %v2704_v9 }
 0x7ad   : > { %v1292_v13 = vsub.f32 %v2786_v8, %v1291_v12 }
 0x7af   : > { %v1293_v14 = vmul.f32 %v1292_v13, %v1292_v13  ;;  %v1313_v41 = vmul.f32 %v1920_v38, %v1292_v13 }
 0x7b1   : > { %v1294_v15 = vsel %vm882_vm1, %v1293_v14, 0.0 }
 0x7b2   : > { %1295 = vadd.xlane.f32.xlu1 %v1294_v15 }
 0x825   : > { %v1296_v19 = vpop.xlane.xlu1 %1295 }
 0x826   : > { %v1297_v20 = vmul.f32 0.032258064, %v1296_v19 }
 0x828   : > { %1946 = vrsqrt.f32 %v1297_v20  ;;  %vm1305_vm10 = vcmp.eq.f32.partialorder %v1297_v20, inf  ;;  %v1308_v33 = vand.u32 2147483648, %v1297_v20  ;;  %vm1307_vm11 = vcmp.eq.f32.partialorder %v1297_v20, 0.0 }
 0x82e   : > { %v1947_v21 = vpop.eup %1946 }
 0x82f   : > { %v1299_v22 = vmul.f32 %v1947_v21, %v1297_v20 }
 0x831   : > { %v1300_v25 = vmul.f32 %v1947_v21, %v1299_v22 }
 0x833   : > { %v1301_v27 = vmul.f32 0.5, %v1300_v25 }
 0x835   : > { %v1302_v29 = vsub.f32 1.5, %v1301_v27 }
 0x837   : > { %v1303_v31 = vmul.f32 %v1947_v21, %v1302_v29 }
 0x839   : > { %v1304_v32 = vmul.f32 %v1303_v31, %v1297_v20 }
 0x83b   : > { %v1306_v34 = vsel %vm1305_vm10, %v1297_v20, %v1304_v32 }
 0x83c   : > { %v1309_v35 = vsel %vm1307_vm11, %v1308_v33, %v1306_v34 }
 0x83d   : > { %v1314_v36 = vadd.f32 1e-06, %v1309_v35 }
 0x83f   : > { %1948 = vrcp.f32 %v1314_v36 }
 0x845   : > { %v1949_v37 = vpop.eup %1948 }
 0x846   : > { %v1316_v39 = vmul.f32 %v1949_v37, %v1314_v36 }
 0x848   : > { %v1317_v40 = vsub.f32 2.0, %v1316_v39 }
 0x84a   : > { %v1318_v42 = vmul.f32 %v1949_v37, %v1317_v40 }
 0x84c   : > { %v1319_v45 = vmul.f32 %v1318_v42, %v1313_v41 }
 0x84e   : > { %v1323_v46 = vadd.f32 %v1921_v44, %v1319_v45 }
 0x850   : > { %1751 = vmatmul.msk.f32.vlgmr.msra.gmra.mxu3 %vm882_vm1, %v1323_v46 }
 0x8d3   : > { %v1352_v51 = vpop.f32.mrf.mxu3 }
 0x8d4   : > { %v1353_v52 = vadd.f32 %v1922_v50, %v1352_v51 }
 0x8d6   : > { %v1355_v53 = vmax.f32 %v1353_v52, 0.0 }
 0x8d8   : > { %1752 = vmatmul.msk.f32.vlgmr.msrb.gmra.mxu0 %vm1364_vm12, %v1355_v53 }
 0x955   : > { %v1385_v43 = vpop.f32.mrf.mxu0 }
 0x956   : > { %v1388_v55 = vadd.f32 %v1385_v43, %v2786_v8  ;;  %1398 = sbr.rel (%p1753_p3) target bundleno = 2678 (0xa76), region = 120 }
 0x958   : > { %v1393_v56 = vadd.f32 %v1923_v54, %v1388_v55 }
 0x95a   : > { %1394 = vst.msk [vmem:[%s2694_s27] sm:$0xff] %vm882_vm1, %v1393_v56 }
 0x95b   : > { %v1401_v57 = vsel %vm882_vm1, %v1393_v56, 0.0  ;;  %v1950_v14 = vld [vmem:[#allocation7] ss:$0 sm:$0xff]  ;;  %v1951_v18 = vld [vmem:[%s2993_s5] ss:$0 sm:$0xff] }
 0x95c   : > { %1402 = vadd.xlane.f32.xlu0 %v1401_v57 }
 0x9cf   : > { %v1403_v58 = vpop.xlane.xlu0 %1402 }
 0x9d0   : > { %v1404_v59 = vmul.f32 %v1403_v58, %v2704_v9 }
 0x9d2   : > { %v1405_v60 = vsub.f32 %v1393_v56, %v1404_v59 }
 0x9d4   : > { %v1406_v61 = vmul.f32 %v1405_v60, %v1405_v60  ;;  %v1426_v17 = vmul.f32 %v1950_v14, %v1405_v60 }
 0x9d6   : > { %v1407_v62 = vsel %vm882_vm1, %v1406_v61, 0.0 }
 0x9d7   : > { %1408 = vadd.xlane.f32.xlu0 %v1407_v62 }
 0xa4a   : > { %v1409_v63 = vpop.xlane.xlu0 %1408 }
 0xa4b   : > { %v1410_v0 = vmul.f32 0.032258064, %v1409_v63 }
 0xa4d   : > { %1952 = vrsqrt.f32 %v1410_v0  ;;  %vm1418_vm13 = vcmp.eq.f32.partialorder %v1410_v0, inf  ;;  %v1421_v10 = vand.u32 2147483648, %v1410_v0  ;;  %vm1420_vm14 = vcmp.eq.f32.partialorder %v1410_v0, 0.0 }
 0xa53   : > { %v1953_v2 = vpop.eup %1952 }
 0xa54   : > { %v1412_v3 = vmul.f32 %v1953_v2, %v1410_v0 }
 0xa56   : > { %v1413_v4 = vmul.f32 %v1953_v2, %v1412_v3 }
 0xa58   : > { %v1414_v5 = vmul.f32 0.5, %v1413_v4 }
 0xa5a   : > { %v1415_v6 = vsub.f32 1.5, %v1414_v5 }
 0xa5c   : > { %v1416_v7 = vmul.f32 %v1953_v2, %v1415_v6 }
 0xa5e   : > { %v1417_v8 = vmul.f32 %v1416_v7, %v1410_v0 }
 0xa60   : > { %v1419_v11 = vsel %vm1418_vm13, %v1410_v0, %v1417_v8 }
 0xa61   : > { %v1422_v9 = vsel %vm1420_vm14, %v1421_v10, %v1419_v11 }
 0xa62   : > { %v1427_v12 = vadd.f32 1e-06, %v1422_v9 }
 0xa64   : > { %1954 = vrcp.f32 %v1427_v12 }
 0xa6a   : > { %v1955_v13 = vpop.eup %1954 }
 0xa6b   : > { %v1429_v15 = vmul.f32 %v1955_v13, %v1427_v12 }
 0xa6d   : > { %v1430_v16 = vsub.f32 2.0, %v1429_v15 }
 0xa6f   : > { %v1431_v1 = vmul.f32 %v1955_v13, %v1430_v16 }
 0xa71   : > { %v1432_v19 = vmul.f32 %v1431_v1, %v1426_v17 }
 0xa73   : > { %v1436_v20 = vadd.f32 %v1951_v18, %v1432_v19 }
 0xa75   : > { %1437 = vst.msk [vmem:[%s2694_s27] sm:$0xff] %vm882_vm1, %v1436_v20 }
 0xa76 PF: > { %s2994_s19 = sld [smem:[#allocation26_spill]]  ;;  %s1451_s14 = sshll.u32 %s2694_s27, 4  ;;  %s1452_s14 = int_to_ptr.vmem [resolvable:$true] %s1451_s14 }
 0xa77   : > { %s2996_s1 = sld [smem:[#allocation51_spill]]  ;;  %s1439_s7 = scalar_lea.sflag [#allocation4], %s2613_s10 }
 0xa7c   : > { %s1755_s11 = sshll.u32 %s2994_s19, 3 }
 0xa7d   : > { %s1449_s2 = scalar_lea.hbm %s2996_s1, %s1755_s11  ;;  %s2186_s23 = scalar_lea.hbm %s2996_s1, 16 }
 0xa7e   : > { %s1453_s28 = sshll.u32 %s1449_s2, 4  ;;  %s1454_s28 = int_to_ptr.hbm [resolvable:$true] %s1453_s28 }
 0xa7f   : > { %s2180_s9 = sshra.s32 %s1454_s28, 4  ;;  %s2181_s9 = int_to_ptr.hbm [resolvable:$true] %s2180_s9 }
 0xa80   : > { %s2182_s13 = scalar_lea.hbm %s2181_s9, 8  ;;  %p2187_p11 = scmp.lt.s32.totalorder %s2181_s9, %s2996_s1 }
 0xa81   : > { %p2183_p4 = scmp.ne.s32.totalorder %s2181_s9, %s2182_s13  ;;  %p2188_p13 = scmp.lt.s32.totalorder %s2186_s23, %s2182_s13 }
 0xa83   : > { %p2184_p7 = pnand %p2183_p4, %p2565_p10  ;;  %p2189_p0 = por %p2188_p13, %p2187_p11 }
 0xa85   : > { %p2185_p8 = pneg %p2184_p7 }
 0xa87   : > { %p2190_p2 = pnand %p2189_p0, %p2185_p8 }
 0xa89   : > { %2193 = shalt.err (!%p2190_p2)
}
 0xa8a   : > { %1778 = dma.vmem_to_hbm [thread:$0]  (%p2565_p10), %s1452_s14, 128, %s1454_s28, %s1439_s7  }
 0xa8b PF: > { %s2997_s10 = sld [smem:[#allocation22_spill]]  ;;  %p1810_p1 = scmp.ge.s32.totalorder %s2304_s0, 2 }
 0xa8d   : > { %p1804_p6 = pnand %p1810_p1, %p2569_p9 }
 0xa8f   : > { %p1805_p12 = pneg %p1804_p6 }
 0xa91   : > { %s1465_s27 = sand.u32 1, %s2997_s10  }
 0xa92   : > { %s1466_s30 = scalar_lea.sflag [#allocation4], %s1465_s27 }
 0xa93   : > { %2259 = dma.done.wait (%p1805_p12), %s1466_s30, 128  }
 0xa94   : > { %2261 = vsyncadd (%p1805_p12), %s1466_s30, 4294967168  ;;  %s41_s0 = sadd.s32 1, %s2304_s0   ;;  %s2998_s16 = sld [smem:[#allocation21_spill]] }
 0xa95   : > { %p38_p5 = scmp.ge.s32.totalorder %s41_s0, 6   ;;  %s2999_s23 = sld [smem:[#allocation31_spill]] }
 0xa96   : > { %s3000_s24 = sld [smem:[#allocation23_spill]]  ;;  %s3007_s21 = smov %s2268_s22 }
 0xa97   : > { %s3001_s25 = sld [smem:[#allocation24_spill]] }
 0xa98   : > { %s3002_s26 = sld [smem:[#allocation34_spill]]  ;;  %40 = sbr.rel (!%p38_p5) target bundleno = 33 (0x21), region = 226 }
 0xa99   : > { %s3003_s27 = sld [smem:[#allocation27_spill]] }
 0xa9a   : > { %s3004_s28 = sld [smem:[#allocation28_spill]]  ;;  %s3008_s22 = smov %s2998_s16 }
 0xa9b   : > { %s3005_s29 = sld [smem:[#allocation30_spill]] }
 0xa9c   : > { %s3006_s30 = sld [smem:[#allocation32_spill]] }
 0xa9d   :  { %1472 = vsyncpa [#allocation3], 1 }
 0xa9e   :  { %1474 = vsyncpa [#allocation3 + $0x1], 1 }
 0xa9f   :  { %1475 = vsyncpa [#allocation6], 1 }
 0xaa0   :  { %1477 = vsyncpa [#allocation6 + $0x1], 1 }
 0xaa1   :  { %1478 = vsyncpa [#allocation9], 1 }
 0xaa2   :  { %1480 = vsyncpa [#allocation9 + $0x1], 1 }
 0xaa3   :  { %1481 = vsyncpa [#allocation12], 1 }
 0xaa4   :  { %1483 = vsyncpa [#allocation12 + $0x1], 1 }
 0xaa5   :  { %1484 = vsyncpa [#allocation4], 1 }
 0xaa6   :  { %1486 = vsyncpa [#allocation4 + $0x1], 1 }

</bundles_post_ra>
